<compile_context>
chip_gen: v5e
topology: v5e:2x2
jax: 0.10.0
libtpu: 0.0.40
codegen_flags: <defaults>
</compile_context>

<pallas_src>
import functools

import jax
import jax.numpy as jnp
from jax.experimental import pallas as pl
from jax.experimental.pallas import tpu as pltpu


LANE = 128          # lane width used for the packed-params slab / padded output


# ------------------------------ param packing ------------------------------

def _round_up8(n):
    return -(-n // 8) * 8


def build_param_layout(dim_in, dim_h, n_layers):
    """Row layout of the packed (ROWS, 128) f32 parameter slab.

    Every parameter gets a sublane-aligned (multiple-of-8) row offset so all
    in-kernel loads are aligned.  Returns ({name: (row_off, nrows, ncols)},
    total_rows).
    """
    layout = {}
    off = 0

    def add(name, nrows, ncols):
        nonlocal off
        layout[name] = (off, nrows, ncols)
        off += _round_up8(nrows)

    add("enc_w", dim_in, dim_h)
    add("enc_b", 1, dim_h)
    for li in range(n_layers):
        add(f"wqkv{li}", dim_h, 3 * dim_h)
        add(f"bqkv{li}", 1, 3 * dim_h)
        add(f"wo{li}", dim_h, dim_h)
        add(f"bo{li}", 1, dim_h)
        add(f"g1{li}", 1, dim_h)
        add(f"be1{li}", 1, dim_h)
        add(f"w1{li}", dim_h, 2 * dim_h)
        add(f"b1{li}", 1, 2 * dim_h)
        add(f"w2{li}", 2 * dim_h, dim_h)
        add(f"b2{li}", 1, dim_h)
        add(f"g2{li}", 1, dim_h)
        add(f"be2{li}", 1, dim_h)
    # Prediction head padded to full lane width so the final store is lane-dense.
    add("head_w", dim_h, LANE)
    add("head_b", 1, LANE)
    return layout, _round_up8(off)


def pack_params(params, layout, total_rows):
    slab = jnp.zeros((total_rows, LANE), jnp.float32)
    for name, arr in params.items():
        r0, _, _ = layout[name]
        slab = slab.at[r0:r0 + arr.shape[0], 0:arr.shape[1]].set(
            arr.astype(jnp.float32))
    return slab


# ------------------------------ fused kernel -------------------------------

def _layernorm(h, gamma, beta, eps):
    mean = jnp.mean(h, axis=-1, keepdims=True)
    c = h - mean
    var = jnp.mean(c * c, axis=-1, keepdims=True)
    return c * jax.lax.rsqrt(var + eps) * gamma + beta


def _exphormer_fwd_kernel(x_ref, mask_ref, params_ref, out_ref, *,
                          layout, n_layers, n_heads, ln_eps):
    # One grid step == one graph (leading batch dim is squeezed by the BlockSpec).
    x = x_ref[...]                 # (N, dim_in)
    mask = mask_ref[...]           # (N, N); mask[dst, src] = multiplicity of edge src->dst
    n = x.shape[0]

    def get(name):                 # static, sublane-aligned slice of the params slab
        r0, nr, nc = layout[name]
        return params_ref[r0:r0 + nr, 0:nc]

    # FeatureEncoder: linear node encoder into dim_h.
    h = jnp.dot(x, get("enc_w"), preferred_element_type=jnp.float32) + get("enc_b")

    dim_h = h.shape[-1]
    dh = dim_h // n_heads
    scale = 1.0 / float(dh) ** 0.5

    for li in range(n_layers):     # static unroll (n_layers = 2)
        h_in = h

        # Fused Q/K/V projection: one MXU pass with 3*dim_h output lanes.
        qkv = (jnp.dot(h, get(f"wqkv{li}"), preferred_element_type=jnp.float32)
               + get(f"bqkv{li}"))
        q = qkv[:, 0 * dim_h:1 * dim_h]
        k = qkv[:, 1 * dim_h:2 * dim_h]
        v = qkv[:, 2 * dim_h:3 * dim_h]

        # Per-head masked exp-attention (scatter-add semantics over real edges,
        # counted with multiplicity).  Head outputs are lane-concatenated once
        # and hit Wo as a single full-width matmul (no serialized contraction-8
        # accumulations).
        head_outs = []
        for hi in range(n_heads):  # static unroll (n_heads = 4)
            qh = q[:, hi * dh:(hi + 1) * dh]
            kh = k[:, hi * dh:(hi + 1) * dh]
            vh = v[:, hi * dh:(hi + 1) * dh]
            # score[dst, src] = (Q[dst] . K[src]) / sqrt(dh), clamped to [-5, 5]
            s = jax.lax.dot_general(qh, kh, (((1,), (1,)), ((), ())),
                                    preferred_element_type=jnp.float32) * scale
            s = jnp.clip(s, -5.0, 5.0)           # keep coupled with exp (overflow guard)
            w = jnp.exp(s) * mask
            wv = jnp.dot(w, vh, preferred_element_type=jnp.float32)
            z = jnp.sum(w, axis=-1, keepdims=True)
            head_outs.append(wv * pl.reciprocal(z + 1e-6, approx=True))
        head_cat = jnp.concatenate(head_outs, axis=-1)          # (N, dim_h)
        attn = (jnp.dot(head_cat, get(f"wo{li}"),
                        preferred_element_type=jnp.float32) + get(f"bo{li}"))

        # Residual + LayerNorm (attention block).
        h = _layernorm(attn + h_in, get(f"g1{li}"), get(f"be1{li}"), ln_eps)

        # FFN block: Linear -> ReLU -> Linear, residual + LayerNorm.
        ffn = (jnp.dot(h, get(f"w1{li}"), preferred_element_type=jnp.float32)
               + get(f"b1{li}"))
        ffn = jnp.maximum(ffn, 0.0)
        ffn = (jnp.dot(ffn, get(f"w2{li}"), preferred_element_type=jnp.float32)
               + get(f"b2{li}"))
        h = _layernorm(ffn + h, get(f"g2{li}"), get(f"be2{li}"), ln_eps)

    # post_mp head, padded to 128 output lanes -> unmasked lane-dense store.
    out = (jnp.dot(h, get("head_w"), preferred_element_type=jnp.float32)
           + get("head_b"))
    out_ref[...] = out.astype(out_ref.dtype)


def exphormer_forward(x, mask, params_slab, layout, *,
                      n_layers, n_heads, dim_h, dim_out, ln_eps=1e-5):
    """x: (B, N, dim_in), mask: (B, N, N), params_slab: (ROWS, 128)."""
    b, n, dim_in = x.shape
    rows = params_slab.shape[0]
    kernel = functools.partial(_exphormer_fwd_kernel, layout=layout,
                               n_layers=n_layers, n_heads=n_heads, ln_eps=ln_eps)

    dh = dim_h // n_heads
    flops_per_graph = 2 * (
        n * dim_in * dim_h
        + n_layers * (n * dim_h * 3 * dim_h          # qkv
                      + n_heads * 2 * n * n * dh     # qk^T + w@v
                      + n * dim_h * dim_h            # Wo
                      + 2 * n * dim_h * 2 * dim_h)   # FFN
        + n * dim_h * LANE)                          # head
    trans_per_graph = n_layers * n_heads * n * n + n_layers * 2 * n
    bytes_accessed = 4 * (x.size + mask.size + b * n * LANE + params_slab.size)

    out = pl.pallas_call(
        kernel,
        out_shape=jax.ShapeDtypeStruct((b, n, LANE), x.dtype),
        grid_spec=pltpu.PrefetchScalarGridSpec(
            num_scalar_prefetch=0,
            grid=(b,),
            in_specs=[
                pl.BlockSpec((None, n, dim_in), lambda i: (i, 0, 0)),
                pl.BlockSpec((None, n, n), lambda i: (i, 0, 0)),
                pl.BlockSpec((rows, LANE), lambda i: (0, 0)),   # shared, resident
            ],
            out_specs=pl.BlockSpec((None, n, LANE), lambda i: (i, 0, 0)),
        ),
        compiler_params=pltpu.CompilerParams(
            dimension_semantics=("parallel",)),
        cost_estimate=pl.CostEstimate(
            flops=int(b * flops_per_graph),
            transcendentals=int(b * trans_per_graph),
            bytes_accessed=int(bytes_accessed)),
    )(x, mask, params_slab)
    return out[:, :, :dim_out]


# --------------------------- model construction ---------------------------

def _init_linear(key, d_in, d_out):
    kw, kb = jax.random.split(key)
    s = 1.0 / float(d_in) ** 0.5
    w = jax.random.uniform(kw, (d_in, d_out), jnp.float32, -s, s)
    b = jax.random.uniform(kb, (1, d_out), jnp.float32, -s, s)
    return w, b


def init_exphormer_params(key, dim_in, dim_h, dim_out, n_layers):
    keys = jax.random.split(key, 2 + n_layers)
    p = {}
    p["enc_w"], p["enc_b"] = _init_linear(keys[0], dim_in, dim_h)
    p["head_w"], p["head_b"] = _init_linear(keys[1], dim_h, dim_out)
    for li in range(n_layers):
        lk = jax.random.split(keys[2 + li], 6)
        wq, bq = _init_linear(lk[0], dim_h, dim_h)
        wk, bk = _init_linear(lk[1], dim_h, dim_h)
        wv, bv = _init_linear(lk[2], dim_h, dim_h)
        p[f"wqkv{li}"] = jnp.concatenate([wq, wk, wv], axis=1)   # (dim_h, 3*dim_h)
        p[f"bqkv{li}"] = jnp.concatenate([bq, bk, bv], axis=1)   # (1, 3*dim_h)
        p[f"wo{li}"], p[f"bo{li}"] = _init_linear(lk[3], dim_h, dim_h)
        p[f"w1{li}"], p[f"b1{li}"] = _init_linear(lk[4], dim_h, 2 * dim_h)
        p[f"w2{li}"], p[f"b2{li}"] = _init_linear(lk[5], 2 * dim_h, dim_h)
        p[f"g1{li}"] = jnp.ones((1, dim_h), jnp.float32)
        p[f"be1{li}"] = jnp.zeros((1, dim_h), jnp.float32)
        p[f"g2{li}"] = jnp.ones((1, dim_h), jnp.float32)
        p[f"be2{li}"] = jnp.zeros((1, dim_h), jnp.float32)
    return p


def build_edge_mask(n, key):
    """Local ring edges + expander (random permutation) edges + self loops,
    mimicking ExpanderEdgeFixer's augmented edge_index as a dense mask.
    Uses .add so duplicate (src, dst) pairs keep their multiplicity, matching
    the reference scatter-add over edge_index."""
    idx = jnp.arange(n)
    nxt = (idx + 1) % n
    perm = jax.random.permutation(key, n)
    src = jnp.concatenate([idx, nxt, idx, perm, idx])
    dst = jnp.concatenate([nxt, idx, perm, idx, idx])
    mask = jnp.zeros((n, n), jnp.float32)
    mask = mask.at[dst, src].add(1.0)   # mask[dst, src] = #edges src->dst
    return mask


# ---------------------------------- main -----------------------------------

if __name__ == "__main__":
    B = 4           # graphs batched per launch (parallel grid axis)
    N = 16          # nodes per graph (multiple of 8)
    DIM_IN = 8      # raw node feature dim
    DIM_H = 32      # cfg.gt.dim_hidden == cfg.gnn.dim_inner
    N_HEADS = 4     # cfg.gt.n_heads
    N_LAYERS = 2    # cfg.gt.layers
    DIM_OUT = 4     # output classes

    key = jax.random.PRNGKey(0)
    k_x, k_graph, k_params = jax.random.split(key, 3)

    x = jax.random.normal(k_x, (B, N, DIM_IN), jnp.float32)
    graph_keys = jax.random.split(k_graph, B)
    mask = jnp.stack([build_edge_mask(N, gk) for gk in graph_keys])

    params = init_exphormer_params(k_params, DIM_IN, DIM_H, DIM_OUT, N_LAYERS)
    layout, total_rows = build_param_layout(DIM_IN, DIM_H, N_LAYERS)
    params_slab = pack_params(params, layout, total_rows)

    out = exphormer_forward(x, mask, params_slab, layout,
                            n_layers=N_LAYERS, n_heads=N_HEADS,
                            dim_h=DIM_H, dim_out=DIM_OUT)
    out = jax.block_until_ready(out)
    assert out.shape == (B, N, DIM_OUT) and out.dtype == jnp.float32
    assert bool(jnp.all(jnp.isfinite(out)))
    print("KERNEL_OK")
</pallas_src>

<mosaic_0001>
module attributes {stable_mosaic.version = 11 : i64} {
  func.func @_exphormer_fwd_kernel(%arg0: i32, %arg1: memref<1x16x8xf32, #tpu.memory_space<vmem>>, %arg2: memref<1x16x16xf32, #tpu.memory_space<vmem>>, %arg3: memref<504x128xf32, #tpu.memory_space<vmem>>, %arg4: memref<1x16x128xf32, #tpu.memory_space<vmem>>) attributes {dimension_semantics = [#tpu.dimension_semantics<parallel>], iteration_bounds = array<i64: 4>, scalar_prefetch = 0 : i64, scratch_operands = 0 : i64, tpu.core_type = #tpu.core_type<tc>, window_params = [{transform_indices = @transform_0, window_bounds = array<i64: 1, 16, 8>}, {transform_indices = @transform_1, window_bounds = array<i64: 1, 16, 16>}, {pipeline_mode = #tpu.pipeline_mode<synchronous>, transform_indices = @transform_2, window_bounds = array<i64: 504, 128>}, {transform_indices = @transform_3, window_bounds = array<i64: 1, 16, 128>}]} {
    %c0 = arith.constant 0 : index
    %c0_0 = arith.constant 0 : index
    %c0_1 = arith.constant 0 : index
    %0 = vector.load %arg1[%c0, %c0_0, %c0_1] : memref<1x16x8xf32, #tpu.memory_space<vmem>>, vector<1x16x8xf32>
    %1 = vector.shape_cast %0 : vector<1x16x8xf32> to vector<16x8xf32>
    %c0_2 = arith.constant 0 : index
    %c0_3 = arith.constant 0 : index
    %c0_4 = arith.constant 0 : index
    %2 = vector.load %arg2[%c0_2, %c0_3, %c0_4] : memref<1x16x16xf32, #tpu.memory_space<vmem>>, vector<1x16x16xf32>
    %3 = vector.shape_cast %2 : vector<1x16x16xf32> to vector<16x16xf32>
    %c0_5 = arith.constant 0 : index
    %c0_6 = arith.constant 0 : index
    %4 = vector.load %arg3[%c0_5, %c0_6] : memref<504x128xf32, #tpu.memory_space<vmem>>, vector<8x32xf32>
    %cst = arith.constant dense<0.000000e+00> : vector<16x32xf32>
    %5 = tpu.matmul %1, %4, %cst {dimension_numbers = #tpu.dot_dimension_numbers<[1], [0], [0], [1], [0, 0, 1, 1], [], []>} : vector<16x8xf32>, vector<8x32xf32>, vector<16x32xf32> -> vector<16x32xf32>
    %c8 = arith.constant 8 : index
    %c0_7 = arith.constant 0 : index
    %6 = vector.load %arg3[%c8, %c0_7] : memref<504x128xf32, #tpu.memory_space<vmem>>, vector<1x32xf32>
    %7 = vector.broadcast %6 : vector<1x32xf32> to vector<16x32xf32>
    %8 = arith.addf %5, %7 : vector<16x32xf32>
    %c16 = arith.constant 16 : index
    %c0_8 = arith.constant 0 : index
    %9 = vector.load %arg3[%c16, %c0_8] : memref<504x128xf32, #tpu.memory_space<vmem>>, vector<32x96xf32>
    %cst_9 = arith.constant dense<0.000000e+00> : vector<16x96xf32>
    %10 = tpu.matmul %8, %9, %cst_9 {dimension_numbers = #tpu.dot_dimension_numbers<[1], [0], [0], [1], [0, 0, 1, 1], [], []>} : vector<16x32xf32>, vector<32x96xf32>, vector<16x96xf32> -> vector<16x96xf32>
    %c48 = arith.constant 48 : index
    %c0_10 = arith.constant 0 : index
    %11 = vector.load %arg3[%c48, %c0_10] : memref<504x128xf32, #tpu.memory_space<vmem>>, vector<1x96xf32>
    %12 = vector.broadcast %11 : vector<1x96xf32> to vector<16x96xf32>
    %13 = arith.addf %10, %12 : vector<16x96xf32>
    %14 = vector.extract_strided_slice %13 {offsets = [0, 0], sizes = [16, 32], strides = [1, 1]} : vector<16x96xf32> to vector<16x32xf32>
    %15 = vector.extract_strided_slice %13 {offsets = [0, 32], sizes = [16, 32], strides = [1, 1]} : vector<16x96xf32> to vector<16x32xf32>
    %16 = vector.extract_strided_slice %13 {offsets = [0, 64], sizes = [16, 32], strides = [1, 1]} : vector<16x96xf32> to vector<16x32xf32>
    %17 = vector.extract_strided_slice %14 {offsets = [0, 0], sizes = [16, 8], strides = [1, 1]} : vector<16x32xf32> to vector<16x8xf32>
    %18 = vector.extract_strided_slice %15 {offsets = [0, 0], sizes = [16, 8], strides = [1, 1]} : vector<16x32xf32> to vector<16x8xf32>
    %19 = vector.extract_strided_slice %16 {offsets = [0, 0], sizes = [16, 8], strides = [1, 1]} : vector<16x32xf32> to vector<16x8xf32>
    %cst_11 = arith.constant dense<0.000000e+00> : vector<16x16xf32>
    %20 = tpu.matmul %17, %18, %cst_11 {dimension_numbers = #tpu.dot_dimension_numbers<[1], [1], [0], [0], [0, 0, 1, 0], [], []>} : vector<16x8xf32>, vector<16x8xf32>, vector<16x16xf32> -> vector<16x16xf32>
    %cst_12 = arith.constant 0.353553385 : f32
    %21 = vector.broadcast %cst_12 : f32 to vector<16x16xf32>
    %22 = arith.mulf %20, %21 : vector<16x16xf32>
    %cst_13 = arith.constant -5.000000e+00 : f32
    %cst_14 = arith.constant 5.000000e+00 : f32
    %23 = vector.broadcast %cst_13 : f32 to vector<16x16xf32>
    %24 = arith.maximumf %23, %22 : vector<16x16xf32>
    %25 = vector.broadcast %cst_14 : f32 to vector<16x16xf32>
    %26 = arith.minimumf %25, %24 : vector<16x16xf32>
    %27 = math.exp %26 : vector<16x16xf32>
    %28 = arith.mulf %27, %3 : vector<16x16xf32>
    %cst_15 = arith.constant dense<0.000000e+00> : vector<16x8xf32>
    %29 = tpu.matmul %28, %19, %cst_15 {dimension_numbers = #tpu.dot_dimension_numbers<[1], [0], [0], [1], [0, 0, 1, 1], [], []>} : vector<16x16xf32>, vector<16x8xf32>, vector<16x8xf32> -> vector<16x8xf32>
    %cst_16 = arith.constant dense<0.000000e+00> : vector<16xf32>
    %30 = vector.multi_reduction <add>, %28, %cst_16 [1] : vector<16x16xf32> to vector<16xf32>
    %31 = vector.shape_cast %30 : vector<16xf32> to vector<16x1xf32>
    %cst_17 = arith.constant 9.99999997E-7 : f32
    %32 = vector.broadcast %cst_17 : f32 to vector<16x1xf32>
    %33 = arith.addf %31, %32 : vector<16x1xf32>
    %34 = tpu.reciprocal %33 {approx = true} : vector<16x1xf32> -> vector<16x1xf32>
    %35 = vector.broadcast %34 : vector<16x1xf32> to vector<16x8xf32>
    %36 = arith.mulf %29, %35 : vector<16x8xf32>
    %37 = vector.extract_strided_slice %14 {offsets = [0, 8], sizes = [16, 8], strides = [1, 1]} : vector<16x32xf32> to vector<16x8xf32>
    %38 = vector.extract_strided_slice %15 {offsets = [0, 8], sizes = [16, 8], strides = [1, 1]} : vector<16x32xf32> to vector<16x8xf32>
    %39 = vector.extract_strided_slice %16 {offsets = [0, 8], sizes = [16, 8], strides = [1, 1]} : vector<16x32xf32> to vector<16x8xf32>
    %cst_18 = arith.constant dense<0.000000e+00> : vector<16x16xf32>
    %40 = tpu.matmul %37, %38, %cst_18 {dimension_numbers = #tpu.dot_dimension_numbers<[1], [1], [0], [0], [0, 0, 1, 0], [], []>} : vector<16x8xf32>, vector<16x8xf32>, vector<16x16xf32> -> vector<16x16xf32>
    %cst_19 = arith.constant 0.353553385 : f32
    %41 = vector.broadcast %cst_19 : f32 to vector<16x16xf32>
    %42 = arith.mulf %40, %41 : vector<16x16xf32>
    %cst_20 = arith.constant -5.000000e+00 : f32
    %cst_21 = arith.constant 5.000000e+00 : f32
    %43 = vector.broadcast %cst_20 : f32 to vector<16x16xf32>
    %44 = arith.maximumf %43, %42 : vector<16x16xf32>
    %45 = vector.broadcast %cst_21 : f32 to vector<16x16xf32>
    %46 = arith.minimumf %45, %44 : vector<16x16xf32>
    %47 = math.exp %46 : vector<16x16xf32>
    %48 = arith.mulf %47, %3 : vector<16x16xf32>
    %cst_22 = arith.constant dense<0.000000e+00> : vector<16x8xf32>
    %49 = tpu.matmul %48, %39, %cst_22 {dimension_numbers = #tpu.dot_dimension_numbers<[1], [0], [0], [1], [0, 0, 1, 1], [], []>} : vector<16x16xf32>, vector<16x8xf32>, vector<16x8xf32> -> vector<16x8xf32>
    %cst_23 = arith.constant dense<0.000000e+00> : vector<16xf32>
    %50 = vector.multi_reduction <add>, %48, %cst_23 [1] : vector<16x16xf32> to vector<16xf32>
    %51 = vector.shape_cast %50 : vector<16xf32> to vector<16x1xf32>
    %cst_24 = arith.constant 9.99999997E-7 : f32
    %52 = vector.broadcast %cst_24 : f32 to vector<16x1xf32>
    %53 = arith.addf %51, %52 : vector<16x1xf32>
    %54 = tpu.reciprocal %53 {approx = true} : vector<16x1xf32> -> vector<16x1xf32>
    %55 = vector.broadcast %54 : vector<16x1xf32> to vector<16x8xf32>
    %56 = arith.mulf %49, %55 : vector<16x8xf32>
    %57 = vector.extract_strided_slice %14 {offsets = [0, 16], sizes = [16, 8], strides = [1, 1]} : vector<16x32xf32> to vector<16x8xf32>
    %58 = vector.extract_strided_slice %15 {offsets = [0, 16], sizes = [16, 8], strides = [1, 1]} : vector<16x32xf32> to vector<16x8xf32>
    %59 = vector.extract_strided_slice %16 {offsets = [0, 16], sizes = [16, 8], strides = [1, 1]} : vector<16x32xf32> to vector<16x8xf32>
    %cst_25 = arith.constant dense<0.000000e+00> : vector<16x16xf32>
    %60 = tpu.matmul %57, %58, %cst_25 {dimension_numbers = #tpu.dot_dimension_numbers<[1], [1], [0], [0], [0, 0, 1, 0], [], []>} : vector<16x8xf32>, vector<16x8xf32>, vector<16x16xf32> -> vector<16x16xf32>
    %cst_26 = arith.constant 0.353553385 : f32
    %61 = vector.broadcast %cst_26 : f32 to vector<16x16xf32>
    %62 = arith.mulf %60, %61 : vector<16x16xf32>
    %cst_27 = arith.constant -5.000000e+00 : f32
    %cst_28 = arith.constant 5.000000e+00 : f32
    %63 = vector.broadcast %cst_27 : f32 to vector<16x16xf32>
    %64 = arith.maximumf %63, %62 : vector<16x16xf32>
    %65 = vector.broadcast %cst_28 : f32 to vector<16x16xf32>
    %66 = arith.minimumf %65, %64 : vector<16x16xf32>
    %67 = math.exp %66 : vector<16x16xf32>
    %68 = arith.mulf %67, %3 : vector<16x16xf32>
    %cst_29 = arith.constant dense<0.000000e+00> : vector<16x8xf32>
    %69 = tpu.matmul %68, %59, %cst_29 {dimension_numbers = #tpu.dot_dimension_numbers<[1], [0], [0], [1], [0, 0, 1, 1], [], []>} : vector<16x16xf32>, vector<16x8xf32>, vector<16x8xf32> -> vector<16x8xf32>
    %cst_30 = arith.constant dense<0.000000e+00> : vector<16xf32>
    %70 = vector.multi_reduction <add>, %68, %cst_30 [1] : vector<16x16xf32> to vector<16xf32>
    %71 = vector.shape_cast %70 : vector<16xf32> to vector<16x1xf32>
    %cst_31 = arith.constant 9.99999997E-7 : f32
    %72 = vector.broadcast %cst_31 : f32 to vector<16x1xf32>
    %73 = arith.addf %71, %72 : vector<16x1xf32>
    %74 = tpu.reciprocal %73 {approx = true} : vector<16x1xf32> -> vector<16x1xf32>
    %75 = vector.broadcast %74 : vector<16x1xf32> to vector<16x8xf32>
    %76 = arith.mulf %69, %75 : vector<16x8xf32>
    %77 = vector.extract_strided_slice %14 {offsets = [0, 24], sizes = [16, 8], strides = [1, 1]} : vector<16x32xf32> to vector<16x8xf32>
    %78 = vector.extract_strided_slice %15 {offsets = [0, 24], sizes = [16, 8], strides = [1, 1]} : vector<16x32xf32> to vector<16x8xf32>
    %79 = vector.extract_strided_slice %16 {offsets = [0, 24], sizes = [16, 8], strides = [1, 1]} : vector<16x32xf32> to vector<16x8xf32>
    %cst_32 = arith.constant dense<0.000000e+00> : vector<16x16xf32>
    %80 = tpu.matmul %77, %78, %cst_32 {dimension_numbers = #tpu.dot_dimension_numbers<[1], [1], [0], [0], [0, 0, 1, 0], [], []>} : vector<16x8xf32>, vector<16x8xf32>, vector<16x16xf32> -> vector<16x16xf32>
    %cst_33 = arith.constant 0.353553385 : f32
    %81 = vector.broadcast %cst_33 : f32 to vector<16x16xf32>
    %82 = arith.mulf %80, %81 : vector<16x16xf32>
    %cst_34 = arith.constant -5.000000e+00 : f32
    %cst_35 = arith.constant 5.000000e+00 : f32
    %83 = vector.broadcast %cst_34 : f32 to vector<16x16xf32>
    %84 = arith.maximumf %83, %82 : vector<16x16xf32>
    %85 = vector.broadcast %cst_35 : f32 to vector<16x16xf32>
    %86 = arith.minimumf %85, %84 : vector<16x16xf32>
    %87 = math.exp %86 : vector<16x16xf32>
    %88 = arith.mulf %87, %3 : vector<16x16xf32>
    %cst_36 = arith.constant dense<0.000000e+00> : vector<16x8xf32>
    %89 = tpu.matmul %88, %79, %cst_36 {dimension_numbers = #tpu.dot_dimension_numbers<[1], [0], [0], [1], [0, 0, 1, 1], [], []>} : vector<16x16xf32>, vector<16x8xf32>, vector<16x8xf32> -> vector<16x8xf32>
    %cst_37 = arith.constant dense<0.000000e+00> : vector<16xf32>
    %90 = vector.multi_reduction <add>, %88, %cst_37 [1] : vector<16x16xf32> to vector<16xf32>
    %91 = vector.shape_cast %90 : vector<16xf32> to vector<16x1xf32>
    %cst_38 = arith.constant 9.99999997E-7 : f32
    %92 = vector.broadcast %cst_38 : f32 to vector<16x1xf32>
    %93 = arith.addf %91, %92 : vector<16x1xf32>
    %94 = tpu.reciprocal %93 {approx = true} : vector<16x1xf32> -> vector<16x1xf32>
    %95 = vector.broadcast %94 : vector<16x1xf32> to vector<16x8xf32>
    %96 = arith.mulf %89, %95 : vector<16x8xf32>
    %97 = tpu.concatenate %36, %56, %76, %96 in 1 : vector<16x8xf32>, vector<16x8xf32>, vector<16x8xf32>, vector<16x8xf32> -> vector<16x32xf32>
    %c56 = arith.constant 56 : index
    %c0_39 = arith.constant 0 : index
    %98 = vector.load %arg3[%c56, %c0_39] : memref<504x128xf32, #tpu.memory_space<vmem>>, vector<32x32xf32>
    %cst_40 = arith.constant dense<0.000000e+00> : vector<16x32xf32>
    %99 = tpu.matmul %97, %98, %cst_40 {dimension_numbers = #tpu.dot_dimension_numbers<[1], [0], [0], [1], [0, 0, 1, 1], [], []>} : vector<16x32xf32>, vector<32x32xf32>, vector<16x32xf32> -> vector<16x32xf32>
    %c88 = arith.constant 88 : index
    %c0_41 = arith.constant 0 : index
    %100 = vector.load %arg3[%c88, %c0_41] : memref<504x128xf32, #tpu.memory_space<vmem>>, vector<1x32xf32>
    %101 = vector.broadcast %100 : vector<1x32xf32> to vector<16x32xf32>
    %102 = arith.addf %99, %101 : vector<16x32xf32>
    %103 = arith.addf %102, %8 : vector<16x32xf32>
    %c96 = arith.constant 96 : index
    %c0_42 = arith.constant 0 : index
    %104 = vector.load %arg3[%c96, %c0_42] : memref<504x128xf32, #tpu.memory_space<vmem>>, vector<1x32xf32>
    %c104 = arith.constant 104 : index
    %c0_43 = arith.constant 0 : index
    %105 = vector.load %arg3[%c104, %c0_43] : memref<504x128xf32, #tpu.memory_space<vmem>>, vector<1x32xf32>
    %cst_44 = arith.constant dense<0.000000e+00> : vector<16xf32>
    %106 = vector.multi_reduction <add>, %103, %cst_44 [1] : vector<16x32xf32> to vector<16xf32>
    %107 = vector.shape_cast %106 : vector<16xf32> to vector<16x1xf32>
    %cst_45 = arith.constant 3.200000e+01 : f32
    %108 = vector.broadcast %cst_45 : f32 to vector<16x1xf32>
    %109 = arith.divf %107, %108 : vector<16x1xf32>
    %110 = vector.broadcast %109 : vector<16x1xf32> to vector<16x32xf32>
    %111 = arith.subf %103, %110 : vector<16x32xf32>
    %112 = arith.mulf %111, %111 : vector<16x32xf32>
    %cst_46 = arith.constant dense<0.000000e+00> : vector<16xf32>
    %113 = vector.multi_reduction <add>, %112, %cst_46 [1] : vector<16x32xf32> to vector<16xf32>
    %114 = vector.shape_cast %113 : vector<16xf32> to vector<16x1xf32>
    %cst_47 = arith.constant 3.200000e+01 : f32
    %115 = vector.broadcast %cst_47 : f32 to vector<16x1xf32>
    %116 = arith.divf %114, %115 : vector<16x1xf32>
    %cst_48 = arith.constant 9.99999974E-6 : f32
    %117 = vector.broadcast %cst_48 : f32 to vector<16x1xf32>
    %118 = arith.addf %116, %117 : vector<16x1xf32>
    %119 = math.rsqrt %118 : vector<16x1xf32>
    %120 = vector.broadcast %119 : vector<16x1xf32> to vector<16x32xf32>
    %121 = arith.mulf %111, %120 : vector<16x32xf32>
    %122 = vector.broadcast %104 : vector<1x32xf32> to vector<16x32xf32>
    %123 = arith.mulf %121, %122 : vector<16x32xf32>
    %124 = vector.broadcast %105 : vector<1x32xf32> to vector<16x32xf32>
    %125 = arith.addf %123, %124 : vector<16x32xf32>
    %c112 = arith.constant 112 : index
    %c0_49 = arith.constant 0 : index
    %126 = vector.load %arg3[%c112, %c0_49] : memref<504x128xf32, #tpu.memory_space<vmem>>, vector<32x64xf32>
    %cst_50 = arith.constant dense<0.000000e+00> : vector<16x64xf32>
    %127 = tpu.matmul %125, %126, %cst_50 {dimension_numbers = #tpu.dot_dimension_numbers<[1], [0], [0], [1], [0, 0, 1, 1], [], []>} : vector<16x32xf32>, vector<32x64xf32>, vector<16x64xf32> -> vector<16x64xf32>
    %c144 = arith.constant 144 : index
    %c0_51 = arith.constant 0 : index
    %128 = vector.load %arg3[%c144, %c0_51] : memref<504x128xf32, #tpu.memory_space<vmem>>, vector<1x64xf32>
    %129 = vector.broadcast %128 : vector<1x64xf32> to vector<16x64xf32>
    %130 = arith.addf %127, %129 : vector<16x64xf32>
    %cst_52 = arith.constant 0.000000e+00 : f32
    %131 = vector.broadcast %cst_52 : f32 to vector<16x64xf32>
    %132 = arith.maximumf %130, %131 : vector<16x64xf32>
    %c152 = arith.constant 152 : index
    %c0_53 = arith.constant 0 : index
    %133 = vector.load %arg3[%c152, %c0_53] : memref<504x128xf32, #tpu.memory_space<vmem>>, vector<64x32xf32>
    %cst_54 = arith.constant dense<0.000000e+00> : vector<16x32xf32>
    %134 = tpu.matmul %132, %133, %cst_54 {dimension_numbers = #tpu.dot_dimension_numbers<[1], [0], [0], [1], [0, 0, 1, 1], [], []>} : vector<16x64xf32>, vector<64x32xf32>, vector<16x32xf32> -> vector<16x32xf32>
    %c216 = arith.constant 216 : index
    %c0_55 = arith.constant 0 : index
    %135 = vector.load %arg3[%c216, %c0_55] : memref<504x128xf32, #tpu.memory_space<vmem>>, vector<1x32xf32>
    %136 = vector.broadcast %135 : vector<1x32xf32> to vector<16x32xf32>
    %137 = arith.addf %134, %136 : vector<16x32xf32>
    %138 = arith.addf %137, %125 : vector<16x32xf32>
    %c224 = arith.constant 224 : index
    %c0_56 = arith.constant 0 : index
    %139 = vector.load %arg3[%c224, %c0_56] : memref<504x128xf32, #tpu.memory_space<vmem>>, vector<1x32xf32>
    %c232 = arith.constant 232 : index
    %c0_57 = arith.constant 0 : index
    %140 = vector.load %arg3[%c232, %c0_57] : memref<504x128xf32, #tpu.memory_space<vmem>>, vector<1x32xf32>
    %cst_58 = arith.constant dense<0.000000e+00> : vector<16xf32>
    %141 = vector.multi_reduction <add>, %138, %cst_58 [1] : vector<16x32xf32> to vector<16xf32>
    %142 = vector.shape_cast %141 : vector<16xf32> to vector<16x1xf32>
    %cst_59 = arith.constant 3.200000e+01 : f32
    %143 = vector.broadcast %cst_59 : f32 to vector<16x1xf32>
    %144 = arith.divf %142, %143 : vector<16x1xf32>
    %145 = vector.broadcast %144 : vector<16x1xf32> to vector<16x32xf32>
    %146 = arith.subf %138, %145 : vector<16x32xf32>
    %147 = arith.mulf %146, %146 : vector<16x32xf32>
    %cst_60 = arith.constant dense<0.000000e+00> : vector<16xf32>
    %148 = vector.multi_reduction <add>, %147, %cst_60 [1] : vector<16x32xf32> to vector<16xf32>
    %149 = vector.shape_cast %148 : vector<16xf32> to vector<16x1xf32>
    %cst_61 = arith.constant 3.200000e+01 : f32
    %150 = vector.broadcast %cst_61 : f32 to vector<16x1xf32>
    %151 = arith.divf %149, %150 : vector<16x1xf32>
    %cst_62 = arith.constant 9.99999974E-6 : f32
    %152 = vector.broadcast %cst_62 : f32 to vector<16x1xf32>
    %153 = arith.addf %151, %152 : vector<16x1xf32>
    %154 = math.rsqrt %153 : vector<16x1xf32>
    %155 = vector.broadcast %154 : vector<16x1xf32> to vector<16x32xf32>
    %156 = arith.mulf %146, %155 : vector<16x32xf32>
    %157 = vector.broadcast %139 : vector<1x32xf32> to vector<16x32xf32>
    %158 = arith.mulf %156, %157 : vector<16x32xf32>
    %159 = vector.broadcast %140 : vector<1x32xf32> to vector<16x32xf32>
    %160 = arith.addf %158, %159 : vector<16x32xf32>
    %c240 = arith.constant 240 : index
    %c0_63 = arith.constant 0 : index
    %161 = vector.load %arg3[%c240, %c0_63] : memref<504x128xf32, #tpu.memory_space<vmem>>, vector<32x96xf32>
    %cst_64 = arith.constant dense<0.000000e+00> : vector<16x96xf32>
    %162 = tpu.matmul %160, %161, %cst_64 {dimension_numbers = #tpu.dot_dimension_numbers<[1], [0], [0], [1], [0, 0, 1, 1], [], []>} : vector<16x32xf32>, vector<32x96xf32>, vector<16x96xf32> -> vector<16x96xf32>
    %c272 = arith.constant 272 : index
    %c0_65 = arith.constant 0 : index
    %163 = vector.load %arg3[%c272, %c0_65] : memref<504x128xf32, #tpu.memory_space<vmem>>, vector<1x96xf32>
    %164 = vector.broadcast %163 : vector<1x96xf32> to vector<16x96xf32>
    %165 = arith.addf %162, %164 : vector<16x96xf32>
    %166 = vector.extract_strided_slice %165 {offsets = [0, 0], sizes = [16, 32], strides = [1, 1]} : vector<16x96xf32> to vector<16x32xf32>
    %167 = vector.extract_strided_slice %165 {offsets = [0, 32], sizes = [16, 32], strides = [1, 1]} : vector<16x96xf32> to vector<16x32xf32>
    %168 = vector.extract_strided_slice %165 {offsets = [0, 64], sizes = [16, 32], strides = [1, 1]} : vector<16x96xf32> to vector<16x32xf32>
    %169 = vector.extract_strided_slice %166 {offsets = [0, 0], sizes = [16, 8], strides = [1, 1]} : vector<16x32xf32> to vector<16x8xf32>
    %170 = vector.extract_strided_slice %167 {offsets = [0, 0], sizes = [16, 8], strides = [1, 1]} : vector<16x32xf32> to vector<16x8xf32>
    %171 = vector.extract_strided_slice %168 {offsets = [0, 0], sizes = [16, 8], strides = [1, 1]} : vector<16x32xf32> to vector<16x8xf32>
    %cst_66 = arith.constant dense<0.000000e+00> : vector<16x16xf32>
    %172 = tpu.matmul %169, %170, %cst_66 {dimension_numbers = #tpu.dot_dimension_numbers<[1], [1], [0], [0], [0, 0, 1, 0], [], []>} : vector<16x8xf32>, vector<16x8xf32>, vector<16x16xf32> -> vector<16x16xf32>
    %cst_67 = arith.constant 0.353553385 : f32
    %173 = vector.broadcast %cst_67 : f32 to vector<16x16xf32>
    %174 = arith.mulf %172, %173 : vector<16x16xf32>
    %cst_68 = arith.constant -5.000000e+00 : f32
    %cst_69 = arith.constant 5.000000e+00 : f32
    %175 = vector.broadcast %cst_68 : f32 to vector<16x16xf32>
    %176 = arith.maximumf %175, %174 : vector<16x16xf32>
    %177 = vector.broadcast %cst_69 : f32 to vector<16x16xf32>
    %178 = arith.minimumf %177, %176 : vector<16x16xf32>
    %179 = math.exp %178 : vector<16x16xf32>
    %180 = arith.mulf %179, %3 : vector<16x16xf32>
    %cst_70 = arith.constant dense<0.000000e+00> : vector<16x8xf32>
    %181 = tpu.matmul %180, %171, %cst_70 {dimension_numbers = #tpu.dot_dimension_numbers<[1], [0], [0], [1], [0, 0, 1, 1], [], []>} : vector<16x16xf32>, vector<16x8xf32>, vector<16x8xf32> -> vector<16x8xf32>
    %cst_71 = arith.constant dense<0.000000e+00> : vector<16xf32>
    %182 = vector.multi_reduction <add>, %180, %cst_71 [1] : vector<16x16xf32> to vector<16xf32>
    %183 = vector.shape_cast %182 : vector<16xf32> to vector<16x1xf32>
    %cst_72 = arith.constant 9.99999997E-7 : f32
    %184 = vector.broadcast %cst_72 : f32 to vector<16x1xf32>
    %185 = arith.addf %183, %184 : vector<16x1xf32>
    %186 = tpu.reciprocal %185 {approx = true} : vector<16x1xf32> -> vector<16x1xf32>
    %187 = vector.broadcast %186 : vector<16x1xf32> to vector<16x8xf32>
    %188 = arith.mulf %181, %187 : vector<16x8xf32>
    %189 = vector.extract_strided_slice %166 {offsets = [0, 8], sizes = [16, 8], strides = [1, 1]} : vector<16x32xf32> to vector<16x8xf32>
    %190 = vector.extract_strided_slice %167 {offsets = [0, 8], sizes = [16, 8], strides = [1, 1]} : vector<16x32xf32> to vector<16x8xf32>
    %191 = vector.extract_strided_slice %168 {offsets = [0, 8], sizes = [16, 8], strides = [1, 1]} : vector<16x32xf32> to vector<16x8xf32>
    %cst_73 = arith.constant dense<0.000000e+00> : vector<16x16xf32>
    %192 = tpu.matmul %189, %190, %cst_73 {dimension_numbers = #tpu.dot_dimension_numbers<[1], [1], [0], [0], [0, 0, 1, 0], [], []>} : vector<16x8xf32>, vector<16x8xf32>, vector<16x16xf32> -> vector<16x16xf32>
    %cst_74 = arith.constant 0.353553385 : f32
    %193 = vector.broadcast %cst_74 : f32 to vector<16x16xf32>
    %194 = arith.mulf %192, %193 : vector<16x16xf32>
    %cst_75 = arith.constant -5.000000e+00 : f32
    %cst_76 = arith.constant 5.000000e+00 : f32
    %195 = vector.broadcast %cst_75 : f32 to vector<16x16xf32>
    %196 = arith.maximumf %195, %194 : vector<16x16xf32>
    %197 = vector.broadcast %cst_76 : f32 to vector<16x16xf32>
    %198 = arith.minimumf %197, %196 : vector<16x16xf32>
    %199 = math.exp %198 : vector<16x16xf32>
    %200 = arith.mulf %199, %3 : vector<16x16xf32>
    %cst_77 = arith.constant dense<0.000000e+00> : vector<16x8xf32>
    %201 = tpu.matmul %200, %191, %cst_77 {dimension_numbers = #tpu.dot_dimension_numbers<[1], [0], [0], [1], [0, 0, 1, 1], [], []>} : vector<16x16xf32>, vector<16x8xf32>, vector<16x8xf32> -> vector<16x8xf32>
    %cst_78 = arith.constant dense<0.000000e+00> : vector<16xf32>
    %202 = vector.multi_reduction <add>, %200, %cst_78 [1] : vector<16x16xf32> to vector<16xf32>
    %203 = vector.shape_cast %202 : vector<16xf32> to vector<16x1xf32>
    %cst_79 = arith.constant 9.99999997E-7 : f32
    %204 = vector.broadcast %cst_79 : f32 to vector<16x1xf32>
    %205 = arith.addf %203, %204 : vector<16x1xf32>
    %206 = tpu.reciprocal %205 {approx = true} : vector<16x1xf32> -> vector<16x1xf32>
    %207 = vector.broadcast %206 : vector<16x1xf32> to vector<16x8xf32>
    %208 = arith.mulf %201, %207 : vector<16x8xf32>
    %209 = vector.extract_strided_slice %166 {offsets = [0, 16], sizes = [16, 8], strides = [1, 1]} : vector<16x32xf32> to vector<16x8xf32>
    %210 = vector.extract_strided_slice %167 {offsets = [0, 16], sizes = [16, 8], strides = [1, 1]} : vector<16x32xf32> to vector<16x8xf32>
    %211 = vector.extract_strided_slice %168 {offsets = [0, 16], sizes = [16, 8], strides = [1, 1]} : vector<16x32xf32> to vector<16x8xf32>
    %cst_80 = arith.constant dense<0.000000e+00> : vector<16x16xf32>
    %212 = tpu.matmul %209, %210, %cst_80 {dimension_numbers = #tpu.dot_dimension_numbers<[1], [1], [0], [0], [0, 0, 1, 0], [], []>} : vector<16x8xf32>, vector<16x8xf32>, vector<16x16xf32> -> vector<16x16xf32>
    %cst_81 = arith.constant 0.353553385 : f32
    %213 = vector.broadcast %cst_81 : f32 to vector<16x16xf32>
    %214 = arith.mulf %212, %213 : vector<16x16xf32>
    %cst_82 = arith.constant -5.000000e+00 : f32
    %cst_83 = arith.constant 5.000000e+00 : f32
    %215 = vector.broadcast %cst_82 : f32 to vector<16x16xf32>
    %216 = arith.maximumf %215, %214 : vector<16x16xf32>
    %217 = vector.broadcast %cst_83 : f32 to vector<16x16xf32>
    %218 = arith.minimumf %217, %216 : vector<16x16xf32>
    %219 = math.exp %218 : vector<16x16xf32>
    %220 = arith.mulf %219, %3 : vector<16x16xf32>
    %cst_84 = arith.constant dense<0.000000e+00> : vector<16x8xf32>
    %221 = tpu.matmul %220, %211, %cst_84 {dimension_numbers = #tpu.dot_dimension_numbers<[1], [0], [0], [1], [0, 0, 1, 1], [], []>} : vector<16x16xf32>, vector<16x8xf32>, vector<16x8xf32> -> vector<16x8xf32>
    %cst_85 = arith.constant dense<0.000000e+00> : vector<16xf32>
    %222 = vector.multi_reduction <add>, %220, %cst_85 [1] : vector<16x16xf32> to vector<16xf32>
    %223 = vector.shape_cast %222 : vector<16xf32> to vector<16x1xf32>
    %cst_86 = arith.constant 9.99999997E-7 : f32
    %224 = vector.broadcast %cst_86 : f32 to vector<16x1xf32>
    %225 = arith.addf %223, %224 : vector<16x1xf32>
    %226 = tpu.reciprocal %225 {approx = true} : vector<16x1xf32> -> vector<16x1xf32>
    %227 = vector.broadcast %226 : vector<16x1xf32> to vector<16x8xf32>
    %228 = arith.mulf %221, %227 : vector<16x8xf32>
    %229 = vector.extract_strided_slice %166 {offsets = [0, 24], sizes = [16, 8], strides = [1, 1]} : vector<16x32xf32> to vector<16x8xf32>
    %230 = vector.extract_strided_slice %167 {offsets = [0, 24], sizes = [16, 8], strides = [1, 1]} : vector<16x32xf32> to vector<16x8xf32>
    %231 = vector.extract_strided_slice %168 {offsets = [0, 24], sizes = [16, 8], strides = [1, 1]} : vector<16x32xf32> to vector<16x8xf32>
    %cst_87 = arith.constant dense<0.000000e+00> : vector<16x16xf32>
    %232 = tpu.matmul %229, %230, %cst_87 {dimension_numbers = #tpu.dot_dimension_numbers<[1], [1], [0], [0], [0, 0, 1, 0], [], []>} : vector<16x8xf32>, vector<16x8xf32>, vector<16x16xf32> -> vector<16x16xf32>
    %cst_88 = arith.constant 0.353553385 : f32
    %233 = vector.broadcast %cst_88 : f32 to vector<16x16xf32>
    %234 = arith.mulf %232, %233 : vector<16x16xf32>
    %cst_89 = arith.constant -5.000000e+00 : f32
    %cst_90 = arith.constant 5.000000e+00 : f32
    %235 = vector.broadcast %cst_89 : f32 to vector<16x16xf32>
    %236 = arith.maximumf %235, %234 : vector<16x16xf32>
    %237 = vector.broadcast %cst_90 : f32 to vector<16x16xf32>
    %238 = arith.minimumf %237, %236 : vector<16x16xf32>
    %239 = math.exp %238 : vector<16x16xf32>
    %240 = arith.mulf %239, %3 : vector<16x16xf32>
    %cst_91 = arith.constant dense<0.000000e+00> : vector<16x8xf32>
    %241 = tpu.matmul %240, %231, %cst_91 {dimension_numbers = #tpu.dot_dimension_numbers<[1], [0], [0], [1], [0, 0, 1, 1], [], []>} : vector<16x16xf32>, vector<16x8xf32>, vector<16x8xf32> -> vector<16x8xf32>
    %cst_92 = arith.constant dense<0.000000e+00> : vector<16xf32>
    %242 = vector.multi_reduction <add>, %240, %cst_92 [1] : vector<16x16xf32> to vector<16xf32>
    %243 = vector.shape_cast %242 : vector<16xf32> to vector<16x1xf32>
    %cst_93 = arith.constant 9.99999997E-7 : f32
    %244 = vector.broadcast %cst_93 : f32 to vector<16x1xf32>
    %245 = arith.addf %243, %244 : vector<16x1xf32>
    %246 = tpu.reciprocal %245 {approx = true} : vector<16x1xf32> -> vector<16x1xf32>
    %247 = vector.broadcast %246 : vector<16x1xf32> to vector<16x8xf32>
    %248 = arith.mulf %241, %247 : vector<16x8xf32>
    %249 = tpu.concatenate %188, %208, %228, %248 in 1 : vector<16x8xf32>, vector<16x8xf32>, vector<16x8xf32>, vector<16x8xf32> -> vector<16x32xf32>
    %c280 = arith.constant 280 : index
    %c0_94 = arith.constant 0 : index
    %250 = vector.load %arg3[%c280, %c0_94] : memref<504x128xf32, #tpu.memory_space<vmem>>, vector<32x32xf32>
    %cst_95 = arith.constant dense<0.000000e+00> : vector<16x32xf32>
    %251 = tpu.matmul %249, %250, %cst_95 {dimension_numbers = #tpu.dot_dimension_numbers<[1], [0], [0], [1], [0, 0, 1, 1], [], []>} : vector<16x32xf32>, vector<32x32xf32>, vector<16x32xf32> -> vector<16x32xf32>
    %c312 = arith.constant 312 : index
    %c0_96 = arith.constant 0 : index
    %252 = vector.load %arg3[%c312, %c0_96] : memref<504x128xf32, #tpu.memory_space<vmem>>, vector<1x32xf32>
    %253 = vector.broadcast %252 : vector<1x32xf32> to vector<16x32xf32>
    %254 = arith.addf %251, %253 : vector<16x32xf32>
    %255 = arith.addf %254, %160 : vector<16x32xf32>
    %c320 = arith.constant 320 : index
    %c0_97 = arith.constant 0 : index
    %256 = vector.load %arg3[%c320, %c0_97] : memref<504x128xf32, #tpu.memory_space<vmem>>, vector<1x32xf32>
    %c328 = arith.constant 328 : index
    %c0_98 = arith.constant 0 : index
    %257 = vector.load %arg3[%c328, %c0_98] : memref<504x128xf32, #tpu.memory_space<vmem>>, vector<1x32xf32>
    %cst_99 = arith.constant dense<0.000000e+00> : vector<16xf32>
    %258 = vector.multi_reduction <add>, %255, %cst_99 [1] : vector<16x32xf32> to vector<16xf32>
    %259 = vector.shape_cast %258 : vector<16xf32> to vector<16x1xf32>
    %cst_100 = arith.constant 3.200000e+01 : f32
    %260 = vector.broadcast %cst_100 : f32 to vector<16x1xf32>
    %261 = arith.divf %259, %260 : vector<16x1xf32>
    %262 = vector.broadcast %261 : vector<16x1xf32> to vector<16x32xf32>
    %263 = arith.subf %255, %262 : vector<16x32xf32>
    %264 = arith.mulf %263, %263 : vector<16x32xf32>
    %cst_101 = arith.constant dense<0.000000e+00> : vector<16xf32>
    %265 = vector.multi_reduction <add>, %264, %cst_101 [1] : vector<16x32xf32> to vector<16xf32>
    %266 = vector.shape_cast %265 : vector<16xf32> to vector<16x1xf32>
    %cst_102 = arith.constant 3.200000e+01 : f32
    %267 = vector.broadcast %cst_102 : f32 to vector<16x1xf32>
    %268 = arith.divf %266, %267 : vector<16x1xf32>
    %cst_103 = arith.constant 9.99999974E-6 : f32
    %269 = vector.broadcast %cst_103 : f32 to vector<16x1xf32>
    %270 = arith.addf %268, %269 : vector<16x1xf32>
    %271 = math.rsqrt %270 : vector<16x1xf32>
    %272 = vector.broadcast %271 : vector<16x1xf32> to vector<16x32xf32>
    %273 = arith.mulf %263, %272 : vector<16x32xf32>
    %274 = vector.broadcast %256 : vector<1x32xf32> to vector<16x32xf32>
    %275 = arith.mulf %273, %274 : vector<16x32xf32>
    %276 = vector.broadcast %257 : vector<1x32xf32> to vector<16x32xf32>
    %277 = arith.addf %275, %276 : vector<16x32xf32>
    %c336 = arith.constant 336 : index
    %c0_104 = arith.constant 0 : index
    %278 = vector.load %arg3[%c336, %c0_104] : memref<504x128xf32, #tpu.memory_space<vmem>>, vector<32x64xf32>
    %cst_105 = arith.constant dense<0.000000e+00> : vector<16x64xf32>
    %279 = tpu.matmul %277, %278, %cst_105 {dimension_numbers = #tpu.dot_dimension_numbers<[1], [0], [0], [1], [0, 0, 1, 1], [], []>} : vector<16x32xf32>, vector<32x64xf32>, vector<16x64xf32> -> vector<16x64xf32>
    %c368 = arith.constant 368 : index
    %c0_106 = arith.constant 0 : index
    %280 = vector.load %arg3[%c368, %c0_106] : memref<504x128xf32, #tpu.memory_space<vmem>>, vector<1x64xf32>
    %281 = vector.broadcast %280 : vector<1x64xf32> to vector<16x64xf32>
    %282 = arith.addf %279, %281 : vector<16x64xf32>
    %cst_107 = arith.constant 0.000000e+00 : f32
    %283 = vector.broadcast %cst_107 : f32 to vector<16x64xf32>
    %284 = arith.maximumf %282, %283 : vector<16x64xf32>
    %c376 = arith.constant 376 : index
    %c0_108 = arith.constant 0 : index
    %285 = vector.load %arg3[%c376, %c0_108] : memref<504x128xf32, #tpu.memory_space<vmem>>, vector<64x32xf32>
    %cst_109 = arith.constant dense<0.000000e+00> : vector<16x32xf32>
    %286 = tpu.matmul %284, %285, %cst_109 {dimension_numbers = #tpu.dot_dimension_numbers<[1], [0], [0], [1], [0, 0, 1, 1], [], []>} : vector<16x64xf32>, vector<64x32xf32>, vector<16x32xf32> -> vector<16x32xf32>
    %c440 = arith.constant 440 : index
    %c0_110 = arith.constant 0 : index
    %287 = vector.load %arg3[%c440, %c0_110] : memref<504x128xf32, #tpu.memory_space<vmem>>, vector<1x32xf32>
    %288 = vector.broadcast %287 : vector<1x32xf32> to vector<16x32xf32>
    %289 = arith.addf %286, %288 : vector<16x32xf32>
    %290 = arith.addf %289, %277 : vector<16x32xf32>
    %c448 = arith.constant 448 : index
    %c0_111 = arith.constant 0 : index
    %291 = vector.load %arg3[%c448, %c0_111] : memref<504x128xf32, #tpu.memory_space<vmem>>, vector<1x32xf32>
    %c456 = arith.constant 456 : index
    %c0_112 = arith.constant 0 : index
    %292 = vector.load %arg3[%c456, %c0_112] : memref<504x128xf32, #tpu.memory_space<vmem>>, vector<1x32xf32>
    %cst_113 = arith.constant dense<0.000000e+00> : vector<16xf32>
    %293 = vector.multi_reduction <add>, %290, %cst_113 [1] : vector<16x32xf32> to vector<16xf32>
    %294 = vector.shape_cast %293 : vector<16xf32> to vector<16x1xf32>
    %cst_114 = arith.constant 3.200000e+01 : f32
    %295 = vector.broadcast %cst_114 : f32 to vector<16x1xf32>
    %296 = arith.divf %294, %295 : vector<16x1xf32>
    %297 = vector.broadcast %296 : vector<16x1xf32> to vector<16x32xf32>
    %298 = arith.subf %290, %297 : vector<16x32xf32>
    %299 = arith.mulf %298, %298 : vector<16x32xf32>
    %cst_115 = arith.constant dense<0.000000e+00> : vector<16xf32>
    %300 = vector.multi_reduction <add>, %299, %cst_115 [1] : vector<16x32xf32> to vector<16xf32>
    %301 = vector.shape_cast %300 : vector<16xf32> to vector<16x1xf32>
    %cst_116 = arith.constant 3.200000e+01 : f32
    %302 = vector.broadcast %cst_116 : f32 to vector<16x1xf32>
    %303 = arith.divf %301, %302 : vector<16x1xf32>
    %cst_117 = arith.constant 9.99999974E-6 : f32
    %304 = vector.broadcast %cst_117 : f32 to vector<16x1xf32>
    %305 = arith.addf %303, %304 : vector<16x1xf32>
    %306 = math.rsqrt %305 : vector<16x1xf32>
    %307 = vector.broadcast %306 : vector<16x1xf32> to vector<16x32xf32>
    %308 = arith.mulf %298, %307 : vector<16x32xf32>
    %309 = vector.broadcast %291 : vector<1x32xf32> to vector<16x32xf32>
    %310 = arith.mulf %308, %309 : vector<16x32xf32>
    %311 = vector.broadcast %292 : vector<1x32xf32> to vector<16x32xf32>
    %312 = arith.addf %310, %311 : vector<16x32xf32>
    %c464 = arith.constant 464 : index
    %c0_118 = arith.constant 0 : index
    %313 = vector.load %arg3[%c464, %c0_118] : memref<504x128xf32, #tpu.memory_space<vmem>>, vector<32x128xf32>
    %cst_119 = arith.constant dense<0.000000e+00> : vector<16x128xf32>
    %314 = tpu.matmul %312, %313, %cst_119 {dimension_numbers = #tpu.dot_dimension_numbers<[1], [0], [0], [1], [0, 0, 1, 1], [], []>} : vector<16x32xf32>, vector<32x128xf32>, vector<16x128xf32> -> vector<16x128xf32>
    %c496 = arith.constant 496 : index
    %c0_120 = arith.constant 0 : index
    %315 = vector.load %arg3[%c496, %c0_120] : memref<504x128xf32, #tpu.memory_space<vmem>>, vector<1x128xf32>
    %316 = vector.broadcast %315 : vector<1x128xf32> to vector<16x128xf32>
    %317 = arith.addf %314, %316 : vector<16x128xf32>
    %c0_121 = arith.constant 0 : index
    %c0_122 = arith.constant 0 : index
    %c0_123 = arith.constant 0 : index
    %318 = vector.load %arg4[%c0_121, %c0_122, %c0_123] : memref<1x16x128xf32, #tpu.memory_space<vmem>>, vector<1x16x128xf32>
    %319 = vector.shape_cast %318 : vector<1x16x128xf32> to vector<16x128xf32>
    %320 = vector.shape_cast %317 : vector<16x128xf32> to vector<1x16x128xf32>
    tpu.vector_store %arg4[%c0_121, %c0_122, %c0_123], %320 {strides = array<i32>} : memref<1x16x128xf32, #tpu.memory_space<vmem>>, vector<1x16x128xf32>,
    return
  }
  func.func @transform_0(%arg0: i32) -> (i32, i32, i32) {
    %c0_i32 = arith.constant 0 : i32
    %c0_i32_0 = arith.constant 0 : i32
    %c0_i32_1 = arith.constant 0 : i32
    return %arg0, %c0_i32, %c0_i32_0 : i32, i32, i32
  }
  func.func @transform_1(%arg0: i32) -> (i32, i32, i32) {
    %c0_i32 = arith.constant 0 : i32
    %c0_i32_0 = arith.constant 0 : i32
    %c0_i32_1 = arith.constant 0 : i32
    return %arg0, %c0_i32, %c0_i32_0 : i32, i32, i32
  }
  func.func @transform_2(%arg0: i32) -> (i32, i32) {
    %c0_i32 = arith.constant 0 : i32
    %c0_i32_0 = arith.constant 0 : i32
    %c0_i32_1 = arith.constant 0 : i32
    return %c0_i32, %c0_i32_0 : i32, i32
  }
  func.func @transform_3(%arg0: i32) -> (i32, i32, i32) {
    %c0_i32 = arith.constant 0 : i32
    %c0_i32_0 = arith.constant 0 : i32
    %c0_i32_1 = arith.constant 0 : i32
    return %arg0, %c0_i32, %c0_i32_0 : i32, i32, i32
  }
}

</mosaic_0001>

<bundles_post_ra>
// kernel: tpu_custom_call.1
= control target key start
LH: loop header
LB: loop body
LE: loop exit
PB: predicated region body
PF: predicated region fallthrough
CT: control target
= control target key end

     0   :  { %8 = vsyncpa [#allocation3], 0  ;;  %s2524_s0 = inlined_call_operand.vmem [shape: f32[4,16,8], index: 0, kind: input, shape index: {}]   ;;  %s2525_s1 = inlined_call_operand.vmem [shape: f32[4,16,16], index: 1, kind: input, shape index: {}]   ;;  %s2526_s2 = inlined_call_operand.hbm [shape: f32[504,128], index: 2, kind: input, shape index: {}]   ;;  %s2527_s3 = inlined_call_operand.hbm [shape: f32[4,16,128], index: 3, kind: output, shape index: {}]  }
   0x1   :  { %9 = vsyncpa [#allocation4], 0 }
   0x2   :  { %11 = vsyncpa [#allocation4 + $0x1], 0  ;;  %s2192_s12 = smov 0   ;;  %s2194_s13 = smov 0  }
   0x3   :  { %s2196_s14 = smov 0   ;;  %s2198_s15 = smov 0  }
   0x4 LB: > { %s2213_s16 = sadd.s32 4294967295, %s2151_s15   ;;  %s1741_s17 = sadd.s32 4294967294, %s2151_s15   ;;  %s2151_s15 = sphi %s2198_s15, %s2533_s15   ;;  %s2147_s14 = sphi %s2196_s14, %s2532_s14   ;;  %s2143_s13 = sphi %s2194_s13, %s2531_s13   ;;  %s2139_s12 = sphi %s2192_s12, %s2530_s12  }
   0x5   : > { %s2217_s18 = sadd.s32 1, %s2151_s15   ;;  %s97_s19 = sadd.s32 1, %s2147_s14 }
   0x6   : > { %s94_s20 = ssub.s32 %s2151_s15, %s2217_s18  ;;  %p107_p0 = scmp.ne.s32.totalorder %s2147_s14, %s2143_s13 }
   0x7   : > { %p95_p1 = scmp.eq.s32.totalorder %s94_s20, 0  ;;  %p108_p2 = scmp.eq.s32.totalorder %s2213_s16, 3 }
   0x8   : > { %p113_p3 = scmp.ne.s32.totalorder %s2143_s13, %s2139_s12  ;;  %p114_p4 = scmp.eq.s32.totalorder %s1741_s17, 3 }
   0x9   : > { %s2228_s21 = scalar_select %p95_p1, %s2147_s14, %s97_s19  }
   0xa   : > { %p2230_p5 = por %p108_p2, %p107_p0  ;;  %p2234_p6 = por %p114_p4, %p113_p3 }
   0xb   : > { %p1742_p7 = scmp.ge.s32.totalorder %s2151_s15, 1  ;;  %p121_p8 = scmp.lt.s32.totalorder %s2151_s15, 5 }
   0xc   : > { %p1861_p9 = scmp.eq.s32.totalorder %s2213_s16, 0  ;;  %s132_s26 = sshll.u32 %s2526_s2, 4  ;;  %s133_s26 = int_to_ptr.hbm [resolvable:$true] %s132_s26 }
   0xd   : > { %p122_p10 = pnand %p1742_p7, %p121_p8  ;;  %s2153_s27 = smov [#allocation2]  }
   0xe   : > { %s134_s28 = sshll.u32 %s2153_s27, 4  ;;  %s2154_s29 = smov 128   ;;  %s135_s28 = int_to_ptr.vmem [resolvable:$true] %s134_s28 }
   0xf   : > { %p1853_p11 = pneg %p122_p10  ;;  %s2155_s30 = smov 8  }
  0x10   : > { %166 = sbr.rel (%p122_p10) target bundleno = 3649 (0xe41), region = 32 }
  0x11   : > { %p1854_p12 = pnand %p1861_p9, %p1853_p11 }
  0x13   : > { %1856 = dma.hbm_to_vmem [thread:$0]  (!%p1854_p12), %s133_s26, 8064, %s135_s28, [#allocation3], %s2154_s29, %s2154_s29, %s2155_s30  }
  0x15   : > { %2130 = dma.done.wait (%p1861_p9), [#allocation3], 8064  }
  0x16   : > { %2132 = vsyncadd (%p1861_p9), [#allocation3], 4294959232  ;;  %p196_p13 = scmp.lt.s32.totalorder %s2213_s16, 3  ;;  %vm213_vm0 = vcmask 64512   ;;  %v210_v0 = vld [vmem:[#allocation2] sm:$0xff]  ;;  %v246_v3 = vld [vmem:[#allocation2 + $0x28] sm:$0xff] }
  0x17   : > { %235 = vmatpush.msra.mxu0 %v210_v0  ;;  %1844 = vmatpush.msra.mxu2 %v210_v0  ;;  %v245_v4 = vld [vmem:[#allocation2 + $0x20] sm:$0xff]  ;;  %v244_v5 = vld [vmem:[#allocation2 + $0x18] sm:$0xff]  ;;  %v243_v6 = vld [vmem:[#allocation2 + $0x10] sm:$0xff]  ;;  %vm249_vm1 = vcmask 261120   ;;  %s2156_s9 = smov 120   ;;  %s2157_s10 = smov 88  }
  0x18   : > { %s2252_s4 = scalar_select %p196_p13, %s2213_s16, 3  ;;  %268 = vmatpush.msra.mxu1 %v246_v3  ;;  %v1955_v7 = vld [vmem:[#allocation2 + $0x8] ss:$0 sm:$0xff]  ;;  %v1956_v12 = vld [vmem:[#allocation2 + $0x30] ss:$0 sm:$0xff]  ;;  %vm334_vm2 = vcmask 130048  }
  0x19   : > { %s2158_s11 = smov 96   ;;  %s2159_s17 = smov 64   ;;  %vm698_vm3 = vcmask 195584   ;;  %vm844_vm11 = vcmask 523264  }
  0x1a   : > { %s1841_s5 = sshll.u32 %s2252_s4, 4  ;;  %269 = vmatpush.msra.mxu1 %v245_v4  ;;  %s2160_s19 = smov 72  }
  0x1b   : > { %s200_s8 = scalar_lea.vmem %s2524_s0, %s1841_s5  ;;  %s2161_s20 = smov 80  }
  0x1c   : > { %v206_v1 = vld [vmem:[%s200_s8] sm:$0xff]  ;;  %v207_v2 = vld [vmem:[%s200_s8 + $0x8] sm:$0xff]  ;;  %270 = vmatpush.msra.mxu1 %v244_v5  ;;  %s2162_s24 = smov 112   ;;  %s2163_s25 = smov 104  }
  0x1d   : > { %1752 = vmatmul.msk.f32.vlgmr.msra.gmra.mxu0 %vm213_vm0, %v206_v1  ;;  %1753 = vmatmul.msk.f32.vlgmr.msra.gmra.mxu2 %vm213_vm0, %v207_v2  ;;  %s2164_s26 = smov 40   ;;  %s2165_s27 = smov 48  }
  0x1e   : > { %271 = vmatpush.msra.mxu1 %v243_v6  ;;  %s2166_s28 = smov 56   ;;  %s205_s6 = scalar_lea.vmem %s2525_s1, %s1841_s5 }
  0x1f   : > { %v2309_v48 = vld [vmem:[%s205_s6] sm:$0xff]  ;;  %v2315_v1 = vld [vmem:[%s205_s6 + $0x8] sm:$0xff]  ;;  %s2167_s4 = smov 8   ;;  %s2168_s5 = smov 24  }
  0x20   : > { %s2169_s7 = smov 16   ;;  %s193_s8 = sand.u32 1, %s2143_s13  }
  0x21   : > { %s2105_s30 = scalar_lea.hbm %s2527_s3, 64 }
  0x9a   : > { %v237_v8 = vpop.f32.mrf.mxu0 }
  0x9b   : > { %v2262_v9 = vadd.f32 %v1955_v7, %v237_v8 }
  0x9d   : > { %1754 = vmatmul.msk.f32.vlgmr.msra.gmra.mxu1 %vm249_vm1, %v2262_v9 }
  0xa0   : > { %v240_v10 = vpop.f32.mrf.mxu2 }
  0xa1   : > { %v2266_v11 = vadd.f32 %v1955_v7, %v240_v10 }
  0xa5   : > { %1755 = vmatmul.msk.f32.gmra.mxu1 %vm249_vm1, %v2266_v11 }
 0x11a   : > { %v273_v13 = vpop.f32.mrf.mxu1 }
 0x11b   : > { %v274_v14 = vadd.f32 %v1956_v12, %v273_v13 }
 0x11d   : > { %376 = vrot.lane.b32.xlu2 %v274_v14, %s2156_s9 }
 0x122   : > { %v276_v15 = vpop.f32.mrf.mxu1 }
 0x123   : > { %v277_v16 = vadd.f32 %v1956_v12, %v276_v15 }
 0x125   : > { %382 = vrot.lane.b32.xlu1 %v277_v16, %s2157_s10  ;;  %283 = vrot.lane.b32.xlu0 %v277_v16, %s2158_s11  ;;  %v1915_v17 = vpack.i.bf16 %v274_v14, %v277_v16 }
 0x127   : > { %1916 = vrot.lane.b32.xlu2 %v1915_v17, %s2159_s17 }
 0x12d   : > { %380 = vrot.lane.b32.xlu1 %v274_v14, %s2157_s10  ;;  %281 = vrot.lane.b32.xlu0 %v274_v14, %s2158_s11 }
 0x12f   : > { %578 = vrot.lane.b32.xlu2 %v277_v16, %s2160_s19 }
 0x135   : > { %480 = vrot.lane.b32.xlu1 %v277_v16, %s2161_s20  ;;  %478 = vrot.lane.b32.xlu0 %v274_v14, %s2161_s20 }
 0x137   : > { %474 = vrot.lane.b32.xlu2 %v274_v14, %s2162_s24 }
 0x13d   : > { %576 = vrot.lane.b32.xlu1 %v274_v14, %s2160_s19  ;;  %378 = vrot.lane.b32.xlu0 %v277_v16, %s2156_s9 }
 0x13f   : > { %574 = vrot.lane.b32.xlu2 %v277_v16, %s2163_s25 }
 0x145   : > { %476 = vrot.lane.b32.xlu1 %v277_v16, %s2162_s24  ;;  %572 = vrot.lane.b32.xlu0 %v274_v14, %s2163_s25 }
 0x147   : > { %1931 = vrot.lane.b32.xlu2 %v1915_v17, %s2164_s26 }
 0x14d   : > { %1926 = vrot.lane.b32.xlu1 %v1915_v17, %s2165_s27  ;;  %1921 = vrot.lane.b32.xlu0 %v1915_v17, %s2166_s28 }
 0x177   : > { %v377_v18 = vpop.permute.xlu2 %376 }
 0x181   : > { %v1917_v19 = vpop.permute.xlu2 %1916 }
 0x182   : > { %v1918_v20 = vunpack.i.l.bf16 %v1917_v19  ;;  %v1919_v21 = vunpack.i.h.bf16 %v1917_v19 }
 0x184   : > { %355 = vmatpush.msrb.mxu1 %v1918_v20  ;;  %1845 = vmatpush.msra.mxu3 %v1918_v20 }
 0x186   : > { %356 = vmatpush.msrb.mxu1 %v1919_v21  ;;  %1846 = vmatpush.msra.mxu3 %v1919_v21 }
 0x189   : > { %v579_v26 = vpop.permute.xlu2 %578 }
 0x191   : > { %v475_v31 = vpop.permute.xlu2 %474 }
 0x197   : > { %v383_v22 = vpop.permute.xlu1 %382  ;;  %v284_v23 = vpop.permute.xlu0 %283 }
 0x198   : > { %1756 = vmatpush.xpose.msk.msrb.mxu2 %vm213_vm0, %v284_v23  ;;  %1764 = vmatpush.xpose.msk.msrb.mxu0 %vm213_vm0, %v383_v22 }
 0x199   : > { %v575_v34 = vpop.permute.xlu2 %574 }
 0x19f   : > { %v381_v24 = vpop.permute.xlu1 %380  ;;  %v282_v25 = vpop.permute.xlu0 %281 }
 0x1a0   : > { %1757 = vmatpush.xpose.msk.msrb.mxu2 %vm213_vm0, %v282_v25  ;;  %1765 = vmatpush.xpose.msk.msrb.mxu0 %vm213_vm0, %v381_v24 }
 0x1a1   : > { %v1932_v2 = vpop.permute.xlu2 %1931 }
 0x1a2   : > { %v1933_v7 = vunpack.i.l.bf16 %v1932_v2  ;;  %v1934_v8 = vunpack.i.h.bf16 %v1932_v2  ;;  %v702_v2 = vld [vmem:[#allocation2 + $0x40] sm:$0xff] }
 0x1a3   : > { %1758 = vmatmul.msk.f32.vlgmr.msrb.gmra.mxu2 %vm213_vm0, %v274_v14  ;;  %1766 = vmatmul.msk.f32.vlgmr.msrb.gmra.mxu0 %vm213_vm0, %v377_v18 }
 0x1a4   : > { %1780 = vmatpush.xpose.msk.msra.mxu0 %vm213_vm0, %v579_v26 }
 0x1a7   : > { %v481_v27 = vpop.permute.xlu1 %480  ;;  %v479_v28 = vpop.permute.xlu0 %478 }
 0x1a8   : > { %1772 = vmatpush.xpose.msk.msra.mxu1 %vm213_vm0, %v481_v27 }
 0x1ab   : > { %1759 = vmatmul.msk.f32.gmra.mxu2 %vm213_vm0, %v277_v16 }
 0x1ac   : > { %1773 = vmatpush.xpose.msk.msra.mxu1 %vm213_vm0, %v479_v28 }
 0x1af   : > { %v577_v29 = vpop.permute.xlu1 %576  ;;  %v379_v30 = vpop.permute.xlu0 %378 }
 0x1b0   : > { %1767 = vmatmul.msk.f32.gmra.mxu0 %vm213_vm0, %v379_v30 }
 0x1b1   : > { %1781 = vmatpush.xpose.msk.msra.mxu0 %vm213_vm0, %v577_v29 }
 0x1b7   : > { %v2300_v32 = vpop.permute.xlu1 %476  ;;  %v573_v33 = vpop.permute.xlu0 %572 }
 0x1b8   : > { %1782 = vmatmul.msk.f32.vlgmr.msra.gmra.mxu0 %vm213_vm0, %v573_v33 }
 0x1bf   : > { %v1927_v35 = vpop.permute.xlu1 %1926  ;;  %v1922_v36 = vpop.permute.xlu0 %1921 }
 0x1c0   : > { %v1928_v37 = vunpack.i.l.bf16 %v1927_v35  ;;  %1783 = vmatmul.msk.f32.gmra.mxu0 %vm213_vm0, %v575_v34  ;;  %v1923_v38 = vunpack.i.l.bf16 %v1922_v36  ;;  %v1929_v39 = vunpack.i.h.bf16 %v1927_v35  ;;  %v1924_v40 = vunpack.i.h.bf16 %v1922_v36 }
 0x1c2   : > { %453 = vmatpush.msrb.mxu3 %v1923_v38  ;;  %551 = vmatpush.msra.mxu2 %v1928_v37 }
 0x1c4   : > { %454 = vmatpush.msrb.mxu3 %v1924_v40  ;;  %552 = vmatpush.msra.mxu2 %v1929_v39 }
 0x220   : > { %v409_v41 = vpop.f32.mrf.mxu0 }
 0x221   : > { %v415_v42 = vmul.f32 0.35355338, %v409_v41 }
 0x223   : > { %v1768_v43 = vclamps-f32 %v415_v42, 5.0 }
 0x225   : > { %v421_v44 = vmul.f32 1.442695, %v1768_v43 }
 0x226   : > { %v310_v45 = vpop.f32.mrf.mxu2 }
 0x227   : > { %1973 = vpow2.f32 %v421_v44  ;;  %v316_v46 = vmul.f32 0.35355338, %v310_v45 }
 0x229   : > { %v1760_v47 = vclamps-f32 %v316_v46, 5.0 }
 0x22b   : > { %v322_v49 = vmul.f32 1.442695, %v1760_v47 }
 0x22d   : > { %v1974_v50 = vpop.eup %1973  ;;  %1975 = vpow2.f32 %v322_v49  ;;  %v412_v51 = vpop.f32.mrf.mxu0 }
 0x22e   : > { %v313_v52 = vpop.f32.mrf.mxu2  ;;  %v425_v53 = vmul.f32 %v1974_v50, %v2309_v48  ;;  %v416_v59 = vmul.f32 0.35355338, %v412_v51 }
 0x22f   : > { %v317_v54 = vmul.f32 0.35355338, %v313_v52 }
 0x230   : > { %v462_v55 = vsel %vm334_vm2, %v425_v53, 0.0  ;;  %v1769_v63 = vclamps-f32 %v416_v59, 5.0 }
 0x231   : > { %v1761_v56 = vclamps-f32 %v317_v54, 5.0  ;;  %463 = vadd.xlane.f32.xlu0 %v462_v55 }
 0x232   : > { %v423_v5 = vmul.f32 1.442695, %v1769_v63 }
 0x233   : > { %v1976_v57 = vpop.eup %1975  ;;  %v324_v58 = vmul.f32 1.442695, %v1761_v56 }
 0x234   : > { %v326_v60 = vmul.f32 %v1976_v57, %v2309_v48 }
 0x235   : > { %1977 = vpow2.f32 %v324_v58  ;;  %v605_v61 = vpop.f32.mrf.mxu0 }
 0x236   : > { %v611_v62 = vmul.f32 0.35355338, %v605_v61  ;;  %1762 = vmatmul.msk.f32.vlgmr.msrb.gmra.mxu1 %vm334_vm2, %v326_v60  ;;  %v364_v21 = vsel %vm334_vm2, %v326_v60, 0.0  ;;  %v704_v61 = vld [vmem:[#allocation2 + $0x50] sm:$0xff] }
 0x237   : > { %725 = vmatpush.msrb.mxu1 %v704_v61  ;;  %v800_v61 = vld [vmem:[#allocation2 + $0x88] sm:$0xff] }
 0x238   : > { %v1784_v0 = vclamps-f32 %v611_v62, 5.0  ;;  %v703_v62 = vld [vmem:[#allocation2 + $0x48] sm:$0xff]  ;;  %821 = vmatpush.msrb.mxu2 %v800_v61 }
 0x239   : > { %726 = vmatpush.msrb.mxu1 %v703_v62  ;;  %v799_v62 = vld [vmem:[#allocation2 + $0x80] sm:$0xff] }
 0x23a   : > { %v617_v3 = vmul.f32 1.442695, %v1784_v0  ;;  %822 = vmatpush.msrb.mxu2 %v799_v62 }
 0x23b   : > { %v1978_v4 = vpop.eup %1977  ;;  %727 = vmatpush.msrb.mxu1 %v702_v2 }
 0x23c   : > { %1979 = vpow2.f32 %v617_v3  ;;  %v327_v6 = vmul.f32 %v1978_v4, %v2315_v1 }
 0x23d   : > { %1981 = vpow2.f32 %v423_v5  ;;  %v608_v13 = vpop.f32.mrf.mxu0 }
 0x23e   : > { %1763 = vmatmul.msk.f32.vlgmr.msra.gmra.mxu3 %vm334_vm2, %v327_v6  ;;  %1774 = vmatmul.msk.f32.vlgmr.msra.gmra.mxu1 %vm213_vm0, %v475_v31  ;;  %v612_v16 = vmul.f32 0.35355338, %v608_v13  ;;  %v367_v43 = vsel %vm334_vm2, %v327_v6, 0.0 }
 0x23f   : > { %649 = vmatpush.msra.mxu3 %v1933_v7 }
 0x240   : > { %v1785_v18 = vclamps-f32 %v612_v16, 5.0 }
 0x241   : > { %650 = vmatpush.msra.mxu3 %v1934_v8 }
 0x242   : > { %v1980_v10 = vpop.eup %1979  ;;  %v619_v20 = vmul.f32 1.442695, %v1785_v18 }
 0x243   : > { %v621_v12 = vmul.f32 %v1980_v10, %v2309_v48  ;;  %v1982_v15 = vpop.eup %1981 }
 0x244   : > { %v426_v17 = vmul.f32 %v1982_v15, %v2315_v1  ;;  %1983 = vpow2.f32 %v619_v20  ;;  %v701_v15 = vld [vmem:[#allocation2 + $0x38] sm:$0xff] }
 0x245   : > { %v658_v14 = vsel %vm334_vm2, %v621_v12, 0.0  ;;  %728 = vmatpush.msrb.mxu1 %v701_v15 }
 0x246   : > { %1775 = vmatmul.msk.f32.gmra.mxu1 %vm213_vm0, %v2300_v32  ;;  %659 = vadd.xlane.f32.xlu2 %v658_v14  ;;  %v465_v19 = vsel %vm334_vm2, %v426_v17, 0.0 }
 0x247   : > { %1770 = vmatmul.msk.f32.vlgmr.msrb.gmra.mxu3 %vm334_vm2, %v425_v53 }
 0x24a   : > { %v1984_v22 = vpop.eup %1983 }
 0x24b   : > { %v622_v23 = vmul.f32 %v1984_v22, %v2315_v1 }
 0x24d   : > { %v661_v40 = vsel %vm334_vm2, %v622_v23, 0.0 }
 0x24e   : > { %466 = vadd.xlane.f32.xlu2 %v465_v19 }
 0x24f   : > { %1771 = vmatmul.msk.f32.gmra.mxu3 %vm334_vm2, %v426_v17 }
 0x256   : > { %365 = vadd.xlane.f32.xlu2 %v364_v21 }
 0x257   : > { %1786 = vmatmul.msk.f32.vlgmr.msra.gmra.mxu3 %vm334_vm2, %v621_v12 }
 0x25f   : > { %1787 = vmatmul.msk.f32.gmra.mxu3 %vm334_vm2, %v622_v23 }
 0x2a4   : > { %v464_v44 = vpop.xlane.xlu0 %463 }
 0x2a5   : > { %v468_v45 = vadd.f32 1e-06, %v464_v44 }
 0x2b3   : > { %v2332_v24 = vpop.f32.mrf.mxu1 }
 0x2b9   : > { %v660_v42 = vpop.xlane.xlu2 %659 }
 0x2ba   : > { %v664_v47 = vadd.f32 1e-06, %v660_v42 }
 0x2bb   : > { %v507_v25 = vpop.f32.mrf.mxu1 }
 0x2bc   : > { %v513_v26 = vmul.f32 0.35355338, %v507_v25 }
 0x2be   : > { %v1776_v27 = vclamps-f32 %v513_v26, 5.0 }
 0x2c0   : > { %v519_v28 = vmul.f32 1.442695, %v1776_v27 }
 0x2c1   : > { %v2337_v36 = vpop.f32.mrf.mxu3  ;;  %v467_v49 = vpop.xlane.xlu2 %466 }
 0x2c2   : > { %1985 = vpow2.f32 %v519_v28  ;;  %v469_v50 = vadd.f32 1e-06, %v467_v49 }
 0x2c3   : > { %v510_v29 = vpop.f32.mrf.mxu1 }
 0x2c4   : > { %v514_v30 = vmul.f32 0.35355338, %v510_v29 }
 0x2c6   : > { %v1777_v31 = vclamps-f32 %v514_v30, 5.0 }
 0x2c8   : > { %v1986_v32 = vpop.eup %1985  ;;  %v521_v33 = vmul.f32 1.442695, %v1777_v31 }
 0x2c9   : > { %v523_v34 = vmul.f32 %v1986_v32, %v2309_v48  ;;  %v366_v16 = vpop.xlane.xlu2 %365 }
 0x2ca   : > { %1987 = vpow2.f32 %v521_v33  ;;  %v456_v41 = vpop.f32.mrf.mxu3  ;;  %v370_v17 = vadd.f32 1e-06, %v366_v16  ;;  %v1959_v16 = vld [vmem:[#allocation2 + $0x68] ss:$0 sm:$0xff] }
 0x2cb   : > { %1778 = vmatmul.msk.f32.vlgmr.msra.gmra.mxu2 %vm334_vm2, %v523_v34  ;;  %v560_v35 = vsel %vm334_vm2, %v523_v34, 0.0  ;;  %1989 = vrcp.f32 %v468_v45  ;;  %v2170_v45 = vmov 32.0  }
 0x2cc   : > { %561 = vadd.xlane.f32.xlu1 %v560_v35  ;;  %1991 = vrcp.f32 %v664_v47 }
 0x2cd   : > { %1993 = vrcp.f32 %v469_v50 }
 0x2d0   : > { %v1988_v37 = vpop.eup %1987 }
 0x2d1   : > { %v524_v38 = vmul.f32 %v1988_v37, %v2315_v1  ;;  %v1990_v51 = vpop.eup %1989  ;;  %v1957_v37 = vld [vmem:[#allocation2 + $0x58] ss:$0 sm:$0xff] }
 0x2d2   : > { %v459_v46 = vpop.f32.mrf.mxu3  ;;  %v472_v52 = vmul.f32 %v1990_v51, %v456_v41  ;;  %v1992_v54 = vpop.eup %1991 }
 0x2d3   : > { %1779 = vmatmul.msk.f32.gmra.mxu2 %vm334_vm2, %v524_v38  ;;  %v563_v39 = vsel %vm334_vm2, %v524_v38, 0.0  ;;  %v1994_v56 = vpop.eup %1993 }
 0x2d4   : > { %564 = vadd.xlane.f32.xlu0 %v563_v39  ;;  %662 = vadd.xlane.f32.xlu1 %v661_v40  ;;  %v473_v57 = vmul.f32 %v1994_v56, %v459_v46 }
 0x2da   : > { %v652_v53 = vpop.f32.mrf.mxu3 }
 0x2db   : > { %v668_v55 = vmul.f32 %v1992_v54, %v652_v53 }
 0x2dc   : > { %368 = vadd.xlane.f32.xlu0 %v367_v43 }
 0x2e2   : > { %v655_v10 = vpop.f32.mrf.mxu3 }
 0x2ed   : > { %672 = vrot.lane.b32.xlu1 %v472_v52, %s2167_s4 }
 0x2f0   : > { %688 = vrot.lane.b32.xlu0 %v668_v55, %s2168_s5 }
 0x2f5   : > { %674 = vrot.lane.b32.xlu1 %v473_v57, %s2167_s4 }
 0x33f   : > { %v562_v58 = vpop.xlane.xlu1 %561 }
 0x340   : > { %v566_v59 = vadd.f32 1e-06, %v562_v58 }
 0x342   : > { %1995 = vrcp.f32 %v566_v59 }
 0x347   : > { %v663_v60 = vpop.xlane.xlu1 %662  ;;  %v565_v63 = vpop.xlane.xlu0 %564 }
 0x348   : > { %v665_v0 = vadd.f32 1e-06, %v663_v60  ;;  %v567_v3 = vadd.f32 1e-06, %v565_v63  ;;  %v1996_v4 = vpop.eup %1995  ;;  %v798_v63 = vld [vmem:[#allocation2 + $0x78] sm:$0xff] }
 0x349   : > { %823 = vmatpush.msrb.mxu2 %v798_v63 }
 0x34a   : > { %1997 = vrcp.f32 %v665_v0  ;;  %v797_v0 = vld [vmem:[#allocation2 + $0x70] sm:$0xff] }
 0x34b   : > { %1999 = vrcp.f32 %v567_v3  ;;  %824 = vmatpush.msrb.mxu2 %v797_v0 }
 0x34c   : > { %2001 = vrcp.f32 %v370_v17 }
 0x34e   : > { %v554_v5 = vpop.f32.mrf.mxu2 }
 0x34f   : > { %v570_v6 = vmul.f32 %v1996_v4, %v554_v5  ;;  %v369_v18 = vpop.xlane.xlu0 %368 }
 0x350   : > { %v1998_v7 = vpop.eup %1997  ;;  %v371_v28 = vadd.f32 1e-06, %v369_v18 }
 0x351   : > { %680 = vrot.lane.b32.xlu2 %v570_v6, %s2169_s7  ;;  %v2000_v8 = vpop.eup %1999  ;;  %v669_v14 = vmul.f32 %v1998_v7, %v655_v10 }
 0x352   : > { %v2002_v19 = vpop.eup %2001  ;;  %2003 = vrcp.f32 %v371_v28 }
 0x353   : > { %v374_v21 = vmul.f32 %v2002_v19, %v2332_v24  ;;  %2005 = vrcp.f32 %v2170_v45  ;;  %v841_v19 = vld [vmem:[#allocation2 + $0xd0] sm:$0xff] }
 0x354   : > { %859 = vmatpush.msrb.mxu0 %v841_v19 }
 0x356   : > { %v557_v12 = vpop.f32.mrf.mxu2 }
 0x357   : > { %v571_v13 = vmul.f32 %v2000_v8, %v557_v12 }
 0x358   : > { %v2004_v29 = vpop.eup %2003 }
 0x359   : > { %682 = vrot.lane.b32.xlu0 %v571_v13, %s2169_s7  ;;  %690 = vrot.lane.b32.xlu2 %v669_v14, %s2168_s5  ;;  %v375_v31 = vmul.f32 %v2004_v29, %v2337_v36  ;;  %v2006_v46 = vpop.eup %2005  ;;  %v1958_v13 = vld [vmem:[#allocation2 + $0x60] ss:$0 sm:$0xff] }
 0x35a   : > { %v747_v47 = vmul.f32 32.0, %v2006_v46  ;;  %vm751_vm4 = vweird.f32 %v2006_v46 }
 0x35c   : > { %v748_v49 = vsub.f32 1.0, %v747_v47  ;;  %v1961_v47 = vld [vmem:[#allocation2 + $0xd8] ss:$0 sm:$0xff] }
 0x35e   : > { %v749_v50 = vmul.f32 %v2006_v46, %v748_v49 }
 0x35f   : > { %v673_v20 = vpop.permute.xlu1 %672 }
 0x360   : > { %v694_v22 = vsel %vm213_vm0, %v374_v21, %v673_v20  ;;  %v750_v51 = vadd.f32 %v2006_v46, %v749_v50  ;;  %v840_v20 = vld [vmem:[#allocation2 + $0xc8] sm:$0xff]  ;;  %v839_v21 = vld [vmem:[#allocation2 + $0xc0] sm:$0xff] }
 0x361   : > { %860 = vmatpush.msrb.mxu0 %v840_v20 }
 0x362   : > { %v689_v25 = vpop.permute.xlu0 %688  ;;  %v2364_v52 = vsel %vm751_vm4, %v2006_v46, %v750_v51 }
 0x363   : > { %861 = vmatpush.msrb.mxu0 %v839_v21  ;;  %v1963_v21 = vld [vmem:[#allocation2 + $0xe8] ss:$0 sm:$0xff] }
 0x367   : > { %v675_v30 = vpop.permute.xlu1 %674 }
 0x368   : > { %v695_v32 = vsel %vm213_vm0, %v375_v31, %v675_v30 }
 0x3ab   : > { %v681_v23 = vpop.permute.xlu2 %680 }
 0x3ac   : > { %v696_v26 = vsel %vm334_vm2, %v694_v22, %v681_v23 }
 0x3ad   : > { %v699_v27 = vsel %vm698_vm3, %v696_v26, %v689_v25  ;;  %v838_v25 = vld [vmem:[#allocation2 + $0xb8] sm:$0xff] }
 0x3ae   : > { %1788 = vmatmul.msk.f32.vlgmr.msrb.gmra.mxu1 %vm249_vm1, %v699_v27  ;;  %v837_v27 = vld [vmem:[#allocation2 + $0xb0] sm:$0xff]  ;;  %862 = vmatpush.msrb.mxu0 %v838_v25 }
 0x3b0   : > { %863 = vmatpush.msrb.mxu0 %v837_v27 }
 0x3b3   : > { %v691_v33 = vpop.permute.xlu2 %690 }
 0x3cb   : > { %v683_v24 = vpop.permute.xlu0 %682 }
 0x3cc   : > { %v697_v34 = vsel %vm334_vm2, %v695_v32, %v683_v24 }
 0x3cd   : > { %v700_v35 = vsel %vm698_vm3, %v697_v34, %v691_v33 }
 0x3ce   : > { %1789 = vmatmul.msk.f32.gmra.mxu1 %vm249_vm1, %v700_v35 }
 0x42b   : > { %v730_v38 = vpop.f32.mrf.mxu1 }
 0x42c   : > { %v731_v39 = vadd.f32 %v1957_v37, %v730_v38  ;;  %v836_v38 = vld [vmem:[#allocation2 + $0xa8] sm:$0xff] }
 0x42d   : > { %864 = vmatpush.msrb.mxu0 %v836_v38  ;;  %v1964_v38 = vld [vmem:[#allocation2 + $0x110] ss:$0 sm:$0xff] }
 0x42e   : > { %v736_v40 = vadd.f32 %v731_v39, %v2262_v9  ;;  %v835_v39 = vld [vmem:[#allocation2 + $0xa0] sm:$0xff] }
 0x42f   : > { %865 = vmatpush.msrb.mxu0 %v835_v39 }
 0x430   : > { %v740_v41 = vsel %vm249_vm1, %v736_v40, 0.0 }
 0x431   : > { %741 = vadd.xlane.f32.xlu1 %v740_v41  ;;  %v1960_v41 = vld [vmem:[#allocation2 + $0x90] ss:$0 sm:$0xff] }
 0x44b   : > { %v733_v42 = vpop.f32.mrf.mxu1 }
 0x44c   : > { %v734_v36 = vadd.f32 %v1957_v37, %v733_v42 }
 0x44e   : > { %v737_v43 = vadd.f32 %v734_v36, %v2266_v11 }
 0x450   : > { %v743_v44 = vsel %vm249_vm1, %v737_v43, 0.0 }
 0x451   : > { %744 = vadd.xlane.f32.xlu0 %v743_v44 }
 0x4a4   : > { %v742_v9 = vpop.xlane.xlu1 %741 }
 0x4a5   : > { %v753_v53 = vmul.f32 %v2364_v52, %v742_v9 }
 0x4a7   : > { %v755_v54 = vsub.f32 %v736_v40, %v753_v53  ;;  %v834_v40 = vld [vmem:[#allocation2 + $0x98] sm:$0xff] }
 0x4a8   : > { %866 = vmatpush.msrb.mxu0 %v834_v40 }
 0x4a9   : > { %v757_v55 = vmul.f32 %v755_v54, %v755_v54 }
 0x4ab   : > { %v759_v11 = vsel %vm249_vm1, %v757_v55, 0.0 }
 0x4ac   : > { %760 = vadd.xlane.f32.xlu2 %v759_v11 }
 0x4c4   : > { %v745_v56 = vpop.xlane.xlu0 %744 }
 0x4c5   : > { %v754_v57 = vmul.f32 %v2364_v52, %v745_v56 }
 0x4c7   : > { %v756_v58 = vsub.f32 %v737_v43, %v754_v57 }
 0x4c9   : > { %v758_v59 = vmul.f32 %v756_v58, %v756_v58 }
 0x4cb   : > { %v762_v60 = vsel %vm249_vm1, %v758_v59, 0.0 }
 0x4cc   : > { %763 = vadd.xlane.f32.xlu1 %v762_v60 }
 0x51f   : > { %v761_v2 = vpop.xlane.xlu2 %760 }
 0x520   : > { %v765_v3 = vmul.f32 %v761_v2, %v2364_v52 }
 0x522   : > { %v767_v4 = vadd.f32 1e-05, %v765_v3  ;;  %v931_v3 = vld [vmem:[#allocation2 + $0x108] sm:$0xff] }
 0x523   : > { %952 = vmatpush.msrb.mxu3 %v931_v3 }
 0x524   : > { %2007 = vrsqrt.f32 %v767_v4  ;;  %vm775_vm6 = vweird.f32 %v767_v4 }
 0x52a   : > { %v2008_v5 = vpop.eup %2007 }
 0x52b   : > { %v770_v6 = vmul.f32 %v2008_v5, %v767_v4  ;;  %vm776_vm5 = vweird.f32 %v2008_v5  ;;  %v930_v4 = vld [vmem:[#allocation2 + $0x100] sm:$0xff] }
 0x52c   : > { %vm777_vm7 = vmor %vm775_vm6, %vm776_vm5  ;;  %953 = vmatpush.msrb.mxu3 %v930_v4 }
 0x52d   : > { %v771_v7 = vmul.f32 %v2008_v5, %v770_v6  ;;  %v928_v6 = vld [vmem:[#allocation2 + $0xf0] sm:$0xff] }
 0x52f   : > { %v772_v8 = vmul.f32 0.5, %v771_v7 }
 0x531   : > { %v773_v10 = vsub.f32 1.5, %v772_v8 }
 0x533   : > { %v774_v12 = vmul.f32 %v2008_v5, %v773_v10 }
 0x535   : > { %v778_v14 = vsel %vm777_vm7, %v2008_v5, %v774_v12  ;;  %v929_v5 = vld [vmem:[#allocation2 + $0xf8] sm:$0xff] }
 0x536   : > { %v789_v15 = vmul.f32 %v778_v14, %v755_v54  ;;  %954 = vmatpush.msrb.mxu3 %v929_v5 }
 0x538   : > { %v792_v17 = vmul.f32 %v1958_v13, %v789_v15  ;;  %955 = vmatpush.msrb.mxu3 %v928_v6 }
 0x53a   : > { %v795_v18 = vadd.f32 %v1959_v16, %v792_v17 }
 0x53c   : > { %1790 = vmatmul.msk.f32.vlgmr.msrb.gmra.mxu2 %vm249_vm1, %v795_v18 }
 0x53f   : > { %v764_v22 = vpop.xlane.xlu1 %763 }
 0x540   : > { %v766_v23 = vmul.f32 %v764_v22, %v2364_v52 }
 0x542   : > { %v768_v26 = vadd.f32 1e-05, %v766_v23 }
 0x544   : > { %2009 = vrsqrt.f32 %v768_v26  ;;  %vm785_vm9 = vweird.f32 %v768_v26 }
 0x54a   : > { %v2010_v28 = vpop.eup %2009 }
 0x54b   : > { %v780_v29 = vmul.f32 %v2010_v28, %v768_v26  ;;  %vm786_vm8 = vweird.f32 %v2010_v28 }
 0x54c   : > { %vm787_vm10 = vmor %vm785_vm9, %vm786_vm8 }
 0x54d   : > { %v781_v30 = vmul.f32 %v2010_v28, %v780_v29 }
 0x54f   : > { %v782_v31 = vmul.f32 0.5, %v781_v30 }
 0x551   : > { %v783_v32 = vsub.f32 1.5, %v782_v31 }
 0x553   : > { %v784_v24 = vmul.f32 %v2010_v28, %v783_v32 }
 0x555   : > { %v788_v33 = vsel %vm787_vm10, %v2010_v28, %v784_v24 }
 0x556   : > { %v790_v34 = vmul.f32 %v788_v33, %v756_v58 }
 0x558   : > { %v793_v35 = vmul.f32 %v1958_v13, %v790_v34 }
 0x55a   : > { %v796_v37 = vadd.f32 %v1959_v16, %v793_v35 }
 0x55c   : > { %1791 = vmatmul.msk.f32.gmra.mxu2 %vm249_vm1, %v796_v37 }
 0x5bf   : > { %v826_v42 = vpop.f32.mrf.mxu2 }
 0x5c0   : > { %v827_v36 = vadd.f32 %v1960_v41, %v826_v42 }
 0x5c2   : > { %v832_v43 = vmax.f32 %v827_v36, 0.0 }
 0x5c4   : > { %1792 = vmatmul.msk.f32.vlgmr.msrb.gmra.mxu0 %vm844_vm11, %v832_v43 }
 0x5df   : > { %v829_v44 = vpop.f32.mrf.mxu2 }
 0x5e0   : > { %v830_v45 = vadd.f32 %v1960_v41, %v829_v44 }
 0x5e2   : > { %v833_v46 = vmax.f32 %v830_v45, 0.0 }
 0x5e4   : > { %1793 = vmatmul.msk.f32.gmra.mxu0 %vm844_vm11, %v833_v46 }
 0x641   : > { %v868_v49 = vpop.f32.mrf.mxu0 }
 0x642   : > { %v869_v50 = vadd.f32 %v1961_v47, %v868_v49 }
 0x644   : > { %v874_v51 = vadd.f32 %v869_v50, %v795_v18  ;;  %v1962_v18 = vld [vmem:[#allocation2 + $0xe0] ss:$0 sm:$0xff] }
 0x646   : > { %v878_v9 = vsel %vm249_vm1, %v874_v51, 0.0 }
 0x647   : > { %879 = vadd.xlane.f32.xlu0 %v878_v9 }
 0x661   : > { %v871_v53 = vpop.f32.mrf.mxu0 }
 0x662   : > { %v872_v54 = vadd.f32 %v1961_v47, %v871_v53 }
 0x664   : > { %v875_v55 = vadd.f32 %v872_v54, %v796_v37 }
 0x666   : > { %v881_v11 = vsel %vm249_vm1, %v875_v55, 0.0 }
 0x667   : > { %882 = vadd.xlane.f32.xlu2 %v881_v11 }
 0x6ba   : > { %v880_v56 = vpop.xlane.xlu0 %879 }
 0x6bb   : > { %v884_v57 = vmul.f32 %v880_v56, %v2364_v52 }
 0x6bd   : > { %v886_v58 = vsub.f32 %v874_v51, %v884_v57 }
 0x6bf   : > { %v888_v59 = vmul.f32 %v886_v58, %v886_v58 }
 0x6c1   : > { %v890_v60 = vsel %vm249_vm1, %v888_v59, 0.0 }
 0x6c2   : > { %891 = vadd.xlane.f32.xlu1 %v890_v60 }
 0x6da   : > { %v883_v61 = vpop.xlane.xlu2 %882 }
 0x6db   : > { %v885_v62 = vmul.f32 %v883_v61, %v2364_v52 }
 0x6dd   : > { %v887_v63 = vsub.f32 %v875_v55, %v885_v62 }
 0x6df   : > { %v889_v0 = vmul.f32 %v887_v63, %v887_v63 }
 0x6e1   : > { %v893_v2 = vsel %vm249_vm1, %v889_v0, 0.0 }
 0x6e2   : > { %894 = vadd.xlane.f32.xlu0 %v893_v2 }
 0x735   : > { %v892_v7 = vpop.xlane.xlu1 %891 }
 0x736   : > { %v896_v8 = vmul.f32 %v892_v7, %v2364_v52 }
 0x738   : > { %v898_v10 = vadd.f32 1e-05, %v896_v8 }
 0x73a   : > { %2011 = vrsqrt.f32 %v898_v10  ;;  %vm906_vm13 = vweird.f32 %v898_v10 }
 0x740   : > { %v2012_v12 = vpop.eup %2011 }
 0x741   : > { %v901_v13 = vmul.f32 %v2012_v12, %v898_v10  ;;  %vm907_vm12 = vweird.f32 %v2012_v12 }
 0x742   : > { %vm908_vm14 = vmor %vm906_vm13, %vm907_vm12 }
 0x743   : > { %v902_v14 = vmul.f32 %v2012_v12, %v901_v13 }
 0x745   : > { %v903_v15 = vmul.f32 0.5, %v902_v14 }
 0x747   : > { %v904_v16 = vsub.f32 1.5, %v903_v15 }
 0x749   : > { %v905_v17 = vmul.f32 %v2012_v12, %v904_v16 }
 0x74b   : > { %v909_v19 = vsel %vm908_vm14, %v2012_v12, %v905_v17 }
 0x74c   : > { %v920_v20 = vmul.f32 %v909_v19, %v886_v58 }
 0x74e   : > { %v923_v22 = vmul.f32 %v1962_v18, %v920_v20 }
 0x750   : > { %v2383_v23 = vadd.f32 %v1963_v21, %v923_v22 }
 0x752   : > { %1794 = vmatmul.msk.f32.vlgmr.msrb.gmra.mxu3 %vm249_vm1, %v2383_v23 }
 0x755   : > { %v895_v25 = vpop.xlane.xlu0 %894 }
 0x756   : > { %v897_v26 = vmul.f32 %v895_v25, %v2364_v52 }
 0x758   : > { %v899_v27 = vadd.f32 1e-05, %v897_v26 }
 0x75a   : > { %2013 = vrsqrt.f32 %v899_v27  ;;  %vm916_vm4 = vweird.f32 %v899_v27 }
 0x760   : > { %v2014_v28 = vpop.eup %2013 }
 0x761   : > { %v911_v29 = vmul.f32 %v2014_v28, %v899_v27  ;;  %vm917_vm15 = vweird.f32 %v2014_v28 }
 0x762   : > { %vm918_vm5 = vmor %vm916_vm4, %vm917_vm15 }
 0x763   : > { %v912_v30 = vmul.f32 %v2014_v28, %v911_v29 }
 0x765   : > { %v913_v31 = vmul.f32 0.5, %v912_v30 }
 0x767   : > { %v914_v32 = vsub.f32 1.5, %v913_v31 }
 0x769   : > { %v915_v24 = vmul.f32 %v2014_v28, %v914_v32 }
 0x76b   : > { %v919_v33 = vsel %vm918_vm5, %v2014_v28, %v915_v24 }
 0x76c   : > { %v921_v34 = vmul.f32 %v919_v33, %v887_v63 }
 0x76e   : > { %v924_v35 = vmul.f32 %v1962_v18, %v921_v34 }
 0x770   : > { %v2388_v37 = vadd.f32 %v1963_v21, %v924_v35 }
 0x772   : > { %1795 = vmatmul.msk.f32.gmra.mxu3 %vm249_vm1, %v2388_v37 }
 0x7d5   : > { %v957_v39 = vpop.f32.mrf.mxu3 }
 0x7d6   : > { %v958_v40 = vadd.f32 %v1964_v38, %v957_v39 }
 0x7d8   : > { %965 = vrot.lane.b32.xlu0 %v958_v40, %s2158_s11 }
 0x7e0   : > { %1059 = vrot.lane.b32.xlu0 %v958_v40, %s2156_s9 }
 0x7f5   : > { %v960_v41 = vpop.f32.mrf.mxu3 }
 0x7f6   : > { %v961_v42 = vadd.f32 %v1964_v38, %v960_v41 }
 0x7f8   : > { %1065 = vrot.lane.b32.xlu1 %v961_v42, %s2157_s10  ;;  %967 = vrot.lane.b32.xlu2 %v961_v42, %s2158_s11  ;;  %v1945_v36 = vpack.i.bf16 %v958_v40, %v961_v42 }
 0x7f9   : > { %1261 = vrot.lane.b32.xlu0 %v961_v42, %s2160_s19 }
 0x800   : > { %1161 = vrot.lane.b32.xlu1 %v958_v40, %s2161_s20  ;;  %1063 = vrot.lane.b32.xlu2 %v958_v40, %s2157_s10  ;;  %s1843_s10 = sshll.u32 %s2213_s16, 4 }
 0x801   : > { %1157 = vrot.lane.b32.xlu0 %v958_v40, %s2162_s24 }
 0x808   : > { %1061 = vrot.lane.b32.xlu1 %v961_v42, %s2156_s9  ;;  %1163 = vrot.lane.b32.xlu2 %v961_v42, %s2161_s20  ;;  %s1747_s9 = sshll.u32 %s193_s8, 4  ;;  %s1651_s20 = scalar_lea.hbm %s2527_s3, %s1843_s10 }
 0x809   : > { %1257 = vrot.lane.b32.xlu0 %v961_v42, %s2163_s25  ;;  %s195_s11 = scalar_lea.vmem [#allocation5], %s1747_s9 }
 0x810   : > { %1255 = vrot.lane.b32.xlu1 %v958_v40, %s2163_s25  ;;  %1259 = vrot.lane.b32.xlu2 %v958_v40, %s2160_s19  ;;  %s1654_s25 = sshll.u32 %s1651_s20, 4  ;;  %s1655_s25 = int_to_ptr.hbm [resolvable:$true] %s1654_s25 }
 0x811   : > { %1946 = vrot.lane.b32.xlu0 %v1945_v36, %s2165_s27  ;;  %s2099_s27 = sshra.s32 %s1655_s25, 4  ;;  %s2100_s27 = int_to_ptr.hbm [resolvable:$true] %s2099_s27 }
 0x812   : > { %p2106_p3 = scmp.lt.s32.totalorder %s2100_s27, %s2527_s3 }
 0x818   : > { %1936 = vrot.lane.b32.xlu1 %v1945_v36, %s2159_s17  ;;  %1159 = vrot.lane.b32.xlu2 %v961_v42, %s2162_s24  ;;  %s1652_s24 = sshll.u32 %s195_s11, 4  ;;  %s1653_s24 = int_to_ptr.vmem [resolvable:$true] %s1652_s24 }
 0x820   : > { %1951 = vrot.lane.b32.xlu1 %v1945_v36, %s2164_s26  ;;  %1941 = vrot.lane.b32.xlu2 %v1945_v36, %s2166_s28  ;;  %s1640_s26 = scalar_lea.sflag [#allocation4], %s193_s8  ;;  %s2101_s28 = scalar_lea.hbm %s2100_s27, 16 }
 0x821   : > { %p2102_p0 = scmp.ne.s32.totalorder %s2100_s27, %s2101_s28  ;;  %p2107_p4 = scmp.lt.s32.totalorder %s2105_s30, %s2101_s28 }
 0x823   : > { %p2103_p1 = pnand %p2102_p0, %p2230_p5  ;;  %p2108_p7 = por %p2107_p4, %p2106_p3 }
 0x825   : > { %p2104_p2 = pneg %p2103_p1 }
 0x827   : > { %p2109_p8 = pnand %p2108_p7, %p2104_p2 }
 0x84a   : > { %v966_v44 = vpop.permute.xlu0 %965 }
 0x852   : > { %v968_v43 = vpop.permute.xlu2 %967  ;;  %v1060_v47 = vpop.permute.xlu0 %1059 }
 0x853   : > { %1796 = vmatpush.xpose.msk.msra.mxu1 %vm213_vm0, %v968_v43 }
 0x857   : > { %1797 = vmatpush.xpose.msk.msra.mxu1 %vm213_vm0, %v966_v44 }
 0x85a   : > { %v1064_v45 = vpop.permute.xlu2 %1063  ;;  %1798 = vmatmul.msk.f32.vlgmr.msra.gmra.mxu1 %vm213_vm0, %v958_v40 }
 0x862   : > { %v1164_v46 = vpop.permute.xlu2 %1163  ;;  %1799 = vmatmul.msk.f32.gmra.mxu1 %vm213_vm0, %v961_v42 }
 0x863   : > { %1812 = vmatpush.xpose.msk.msrb.mxu1 %vm213_vm0, %v1164_v46 }
 0x86a   : > { %v1066_v49 = vpop.permute.xlu1 %1065  ;;  %v1260_v50 = vpop.permute.xlu2 %1259 }
 0x86b   : > { %v1262_v51 = vpop.permute.xlu0 %1261  ;;  %1804 = vmatpush.xpose.msk.msra.mxu0 %vm213_vm0, %v1066_v49 }
 0x86f   : > { %1805 = vmatpush.xpose.msk.msra.mxu0 %vm213_vm0, %v1064_v45 }
 0x872   : > { %v1162_v9 = vpop.permute.xlu1 %1161  ;;  %v1160_v53 = vpop.permute.xlu2 %1159  ;;  %1806 = vmatmul.msk.f32.vlgmr.msra.gmra.mxu0 %vm213_vm0, %v1060_v47 }
 0x873   : > { %1820 = vmatpush.xpose.msk.msrb.mxu0 %vm213_vm0, %v1262_v51  ;;  %1813 = vmatpush.xpose.msk.msrb.mxu1 %vm213_vm0, %v1162_v9  ;;  %v1158_v54 = vpop.permute.xlu0 %1157 }
 0x876   : > { %1814 = vmatmul.msk.f32.vlgmr.msrb.gmra.mxu1 %vm213_vm0, %v1158_v54 }
 0x877   : > { %1821 = vmatpush.xpose.msk.msrb.mxu0 %vm213_vm0, %v1260_v50 }
 0x87a   : > { %v1062_v55 = vpop.permute.xlu1 %1061  ;;  %v1942_v11 = vpop.permute.xlu2 %1941 }
 0x87b   : > { %v1943_v56 = vunpack.i.l.bf16 %v1942_v11  ;;  %1807 = vmatmul.msk.f32.gmra.mxu0 %vm213_vm0, %v1062_v55  ;;  %v1944_v57 = vunpack.i.h.bf16 %v1942_v11  ;;  %v1258_v58 = vpop.permute.xlu0 %1257 }
 0x87d   : > { %1136 = vmatpush.msra.mxu3 %v1943_v56 }
 0x87e   : > { %1815 = vmatmul.msk.f32.gmra.mxu1 %vm213_vm0, %v1160_v53 }
 0x87f   : > { %1137 = vmatpush.msra.mxu3 %v1944_v57 }
 0x882   : > { %v1256_v59 = vpop.permute.xlu1 %1255 }
 0x883   : > { %1822 = vmatmul.msk.f32.vlgmr.msrb.gmra.mxu0 %vm213_vm0, %v1256_v59  ;;  %v1947_v61 = vpop.permute.xlu0 %1946 }
 0x884   : > { %v1948_v0 = vunpack.i.l.bf16 %v1947_v61  ;;  %v1949_v2 = vunpack.i.h.bf16 %v1947_v61 }
 0x88a   : > { %v1937_v60 = vpop.permute.xlu1 %1936 }
 0x88b   : > { %v1938_v62 = vunpack.i.l.bf16 %v1937_v60  ;;  %1823 = vmatmul.msk.f32.gmra.mxu0 %vm213_vm0, %v1258_v58  ;;  %v1939_v63 = vunpack.i.h.bf16 %v1937_v60 }
 0x88d   : > { %1038 = vmatpush.msra.mxu2 %v1938_v62 }
 0x88f   : > { %1039 = vmatpush.msra.mxu2 %v1939_v63 }
 0x891   : > { %1234 = vmatpush.msrb.mxu2 %v1948_v0 }
 0x892   : > { %v1952_v3 = vpop.permute.xlu1 %1951 }
 0x893   : > { %1235 = vmatpush.msrb.mxu2 %v1949_v2  ;;  %v1953_v4 = vunpack.i.l.bf16 %v1952_v3  ;;  %v1954_v5 = vunpack.i.h.bf16 %v1952_v3 }
 0x895   : > { %1332 = vmatpush.msrb.mxu3 %v1953_v4 }
 0x897   : > { %1333 = vmatpush.msrb.mxu3 %v1954_v5 }
 0x8d7   : > { %v994_v6 = vpop.f32.mrf.mxu1 }
 0x8d8   : > { %v1000_v7 = vmul.f32 0.35355338, %v994_v6 }
 0x8da   : > { %v1800_v8 = vclamps-f32 %v1000_v7, 5.0 }
 0x8dc   : > { %v1006_v10 = vmul.f32 1.442695, %v1800_v8 }
 0x8de   : > { %2015 = vpow2.f32 %v1006_v10 }
 0x8df   : > { %v997_v12 = vpop.f32.mrf.mxu1 }
 0x8e0   : > { %v1001_v13 = vmul.f32 0.35355338, %v997_v12 }
 0x8e2   : > { %v1801_v14 = vclamps-f32 %v1001_v13, 5.0 }
 0x8e4   : > { %v2016_v15 = vpop.eup %2015  ;;  %v1008_v16 = vmul.f32 1.442695, %v1801_v14 }
 0x8e5   : > { %v1010_v17 = vmul.f32 %v2016_v15, %v2309_v48 }
 0x8e6   : > { %2017 = vpow2.f32 %v1008_v16 }
 0x8e7   : > { %1802 = vmatmul.msk.f32.vlgmr.msra.gmra.mxu2 %vm334_vm2, %v1010_v17  ;;  %v1047_v60 = vsel %vm334_vm2, %v1010_v17, 0.0 }
 0x8ec   : > { %v2018_v18 = vpop.eup %2017 }
 0x8ed   : > { %v1011_v19 = vmul.f32 %v2018_v18, %v2315_v1 }
 0x8ef   : > { %1803 = vmatmul.msk.f32.gmra.mxu2 %vm334_vm2, %v1011_v19  ;;  %v1092_v20 = vpop.f32.mrf.mxu0  ;;  %v1050_v62 = vsel %vm334_vm2, %v1011_v19, 0.0 }
 0x8f0   : > { %v1098_v21 = vmul.f32 0.35355338, %v1092_v20 }
 0x8f2   : > { %v1808_v22 = vclamps-f32 %v1098_v21, 5.0 }
 0x8f3   : > { %v1190_v25 = vpop.f32.mrf.mxu1 }
 0x8f4   : > { %v1104_v26 = vmul.f32 1.442695, %v1808_v22  ;;  %v1196_v27 = vmul.f32 0.35355338, %v1190_v25 }
 0x8f6   : > { %2019 = vpow2.f32 %v1104_v26  ;;  %v1816_v28 = vclamps-f32 %v1196_v27, 5.0 }
 0x8f8   : > { %v1202_v29 = vmul.f32 1.442695, %v1816_v28  ;;  %v1095_v30 = vpop.f32.mrf.mxu0 }
 0x8f9   : > { %v1099_v31 = vmul.f32 0.35355338, %v1095_v30 }
 0x8fa   : > { %2021 = vpow2.f32 %v1202_v29 }
 0x8fb   : > { %v1809_v32 = vclamps-f32 %v1099_v31, 5.0  ;;  %v1193_v24 = vpop.f32.mrf.mxu1 }
 0x8fc   : > { %v2020_v33 = vpop.eup %2019  ;;  %v1197_v34 = vmul.f32 0.35355338, %v1193_v24 }
 0x8fd   : > { %v1108_v35 = vmul.f32 %v2020_v33, %v2309_v48  ;;  %v1106_v38 = vmul.f32 1.442695, %v1809_v32 }
 0x8fe   : > { %v1817_v39 = vclamps-f32 %v1197_v34, 5.0 }
 0x8ff   : > { %2023 = vpow2.f32 %v1106_v38  ;;  %1810 = vmatmul.msk.f32.vlgmr.msra.gmra.mxu3 %vm334_vm2, %v1108_v35  ;;  %v1145_v40 = vsel %vm334_vm2, %v1108_v35, 0.0  ;;  %v1386_v38 = vld [vmem:[#allocation2 + $0x130] sm:$0xff] }
 0x900   : > { %v2022_v41 = vpop.eup %2021  ;;  %v1204_v42 = vmul.f32 1.442695, %v1817_v39  ;;  %1146 = vadd.xlane.f32.xlu2 %v1145_v40  ;;  %v1288_v36 = vpop.f32.mrf.mxu0  ;;  %v1385_v39 = vld [vmem:[#allocation2 + $0x128] sm:$0xff]  ;;  %1407 = vmatpush.msra.mxu1 %v1386_v38  ;;  %v1384_v40 = vld [vmem:[#allocation2 + $0x120] sm:$0xff] }
 0x901   : > { %v1206_v43 = vmul.f32 %v2022_v41, %v2309_v48  ;;  %v1294_v44 = vmul.f32 0.35355338, %v1288_v36  ;;  %v1383_v41 = vld [vmem:[#allocation2 + $0x118] sm:$0xff] }
 0x902   : > { %2025 = vpow2.f32 %v1204_v42  ;;  %1408 = vmatpush.msra.mxu1 %v1385_v39 }
 0x903   : > { %v1824_v45 = vclamps-f32 %v1294_v44, 5.0  ;;  %1818 = vmatmul.msk.f32.vlgmr.msrb.gmra.mxu2 %vm334_vm2, %v1206_v43  ;;  %v1243_v46 = vsel %vm334_vm2, %v1206_v43, 0.0 }
 0x904   : > { %1244 = vadd.xlane.f32.xlu0 %v1243_v46  ;;  %1409 = vmatpush.msra.mxu1 %v1384_v40  ;;  %v1966_v40 = vld [vmem:[#allocation2 + $0x140] ss:$0 sm:$0xff] }
 0x905   : > { %v2024_v47 = vpop.eup %2023  ;;  %v1300_v49 = vmul.f32 1.442695, %v1824_v45 }
 0x906   : > { %v1109_v50 = vmul.f32 %v2024_v47, %v2315_v1  ;;  %1410 = vmatpush.msra.mxu1 %v1383_v41 }
 0x907   : > { %2027 = vpow2.f32 %v1300_v49 }
 0x908   : > { %v2026_v51 = vpop.eup %2025  ;;  %1811 = vmatmul.msk.f32.gmra.mxu3 %vm334_vm2, %v1109_v50  ;;  %v1291_v9 = vpop.f32.mrf.mxu0  ;;  %v1148_v53 = vsel %vm334_vm2, %v1109_v50, 0.0 }
 0x909   : > { %v1295_v54 = vmul.f32 0.35355338, %v1291_v9  ;;  %1149 = vadd.xlane.f32.xlu2 %v1148_v53  ;;  %v1207_v55 = vmul.f32 %v2026_v51, %v2315_v1 }
 0x90b   : > { %v1825_v11 = vclamps-f32 %v1295_v54, 5.0  ;;  %1819 = vmatmul.msk.f32.gmra.mxu2 %vm334_vm2, %v1207_v55  ;;  %v1246_v56 = vsel %vm334_vm2, %v1207_v55, 0.0 }
 0x90c   : > { %1247 = vadd.xlane.f32.xlu0 %v1246_v56 }
 0x90d   : > { %v2028_v57 = vpop.eup %2027  ;;  %v1302_v58 = vmul.f32 1.442695, %v1825_v11 }
 0x90e   : > { %v1304_v59 = vmul.f32 %v2028_v57, %v2309_v48 }
 0x90f   : > { %2029 = vpow2.f32 %v1302_v58 }
 0x910   : > { %1826 = vmatmul.msk.f32.vlgmr.msrb.gmra.mxu3 %vm334_vm2, %v1304_v59  ;;  %v1341_v61 = vsel %vm334_vm2, %v1304_v59, 0.0 }
 0x911   : > { %1048 = vadd.xlane.f32.xlu2 %v1047_v60  ;;  %1342 = vadd.xlane.f32.xlu1 %v1341_v61  ;;  %v1965_v61 = vld [vmem:[#allocation2 + $0x138] ss:$0 sm:$0xff] }
 0x914   : > { %1051 = vadd.xlane.f32.xlu0 %v1050_v62 }
 0x915   : > { %v2030_v63 = vpop.eup %2029 }
 0x916   : > { %v1305_v0 = vmul.f32 %v2030_v63, %v2315_v1 }
 0x918   : > { %1827 = vmatmul.msk.f32.gmra.mxu3 %vm334_vm2, %v1305_v0  ;;  %v1344_v2 = vsel %vm334_vm2, %v1305_v0, 0.0 }
 0x919   : > { %1345 = vadd.xlane.f32.xlu1 %v1344_v2 }
 0x96a   : > { %v1041_v48 = vpop.f32.mrf.mxu2 }
 0x972   : > { %v2450_v7 = vpop.f32.mrf.mxu2 }
 0x973   : > { %v1147_v3 = vpop.xlane.xlu2 %1146 }
 0x974   : > { %v1151_v4 = vadd.f32 1e-06, %v1147_v3 }
 0x976   : > { %2031 = vrcp.f32 %v1151_v4 }
 0x977   : > { %v1245_v5 = vpop.xlane.xlu0 %1244 }
 0x978   : > { %v1249_v6 = vadd.f32 1e-06, %v1245_v5 }
 0x97a   : > { %2033 = vrcp.f32 %v1249_v6 }
 0x97c   : > { %v1150_v8 = vpop.xlane.xlu2 %1149  ;;  %v2032_v12 = vpop.eup %2031 }
 0x97d   : > { %v1152_v10 = vadd.f32 1e-06, %v1150_v8 }
 0x97f   : > { %2035 = vrcp.f32 %v1152_v10  ;;  %v1248_v22 = vpop.xlane.xlu0 %1247 }
 0x980   : > { %v2034_v15 = vpop.eup %2033  ;;  %v1250_v26 = vadd.f32 1e-06, %v1248_v22  ;;  %v1516_v22 = vld [vmem:[#allocation2 + $0x1b0] sm:$0xff] }
 0x981   : > { %1533 = vmatpush.msra.mxu0 %v1516_v22 }
 0x982   : > { %v1139_v13 = vpop.f32.mrf.mxu3 }
 0x983   : > { %v1155_v14 = vmul.f32 %v2032_v12, %v1139_v13 }
 0x984   : > { %v1343_v1 = vpop.xlane.xlu1 %1342  ;;  %v1049_v42 = vpop.xlane.xlu2 %1048 }
 0x985   : > { %1355 = vrot.lane.b32.xlu1 %v1155_v14, %s2167_s4  ;;  %v1347_v18 = vadd.f32 1e-06, %v1343_v1  ;;  %v2036_v19 = vpop.eup %2035  ;;  %v1053_v36 = vadd.f32 1e-06, %v1049_v42 }
 0x986   : > { %v1237_v16 = vpop.f32.mrf.mxu2 }
 0x987   : > { %v1253_v17 = vmul.f32 %v2034_v15, %v1237_v16  ;;  %2037 = vrcp.f32 %v1347_v18  ;;  %v1052_v43 = vpop.xlane.xlu0 %1051  ;;  %v1474_v16 = vld [vmem:[#allocation2 + $0x160] sm:$0xff]  ;;  %v1472_v18 = vld [vmem:[#allocation2 + $0x150] sm:$0xff] }
 0x988   : > { %2039 = vrcp.f32 %v1250_v26  ;;  %v1054_v45 = vadd.f32 1e-06, %v1052_v43  ;;  %v1514_v26 = vld [vmem:[#allocation2 + $0x1a0] sm:$0xff] }
 0x989   : > { %1363 = vrot.lane.b32.xlu2 %v1253_v17, %s2169_s7  ;;  %v1473_v17 = vld [vmem:[#allocation2 + $0x158] sm:$0xff] }
 0x98b   : > { %v1142_v20 = vpop.f32.mrf.mxu3 }
 0x98c   : > { %v1156_v21 = vmul.f32 %v2036_v19, %v1142_v20  ;;  %v1346_v25 = vpop.xlane.xlu1 %1345 }
 0x98d   : > { %v1348_v27 = vadd.f32 1e-06, %v1346_v25  ;;  %v2038_v28 = vpop.eup %2037  ;;  %v1515_v25 = vld [vmem:[#allocation2 + $0x1a8] sm:$0xff] }
 0x98e   : > { %1357 = vrot.lane.b32.xlu1 %v1156_v21, %s2167_s4  ;;  %v1240_v31 = vpop.f32.mrf.mxu2  ;;  %v2040_v32 = vpop.eup %2039  ;;  %1534 = vmatpush.msra.mxu0 %v1515_v25 }
 0x98f   : > { %2041 = vrcp.f32 %v1348_v27  ;;  %v1254_v34 = vmul.f32 %v2040_v32, %v1240_v31 }
 0x990   : > { %2043 = vrcp.f32 %v1053_v36  ;;  %1535 = vmatpush.msra.mxu0 %v1514_v26 }
 0x991   : > { %2045 = vrcp.f32 %v1054_v45 }
 0x993   : > { %v1335_v29 = vpop.f32.mrf.mxu3 }
 0x994   : > { %v1351_v30 = vmul.f32 %v2038_v28, %v1335_v29  ;;  %v1513_v29 = vld [vmem:[#allocation2 + $0x198] sm:$0xff] }
 0x995   : > { %v2042_v24 = vpop.eup %2041  ;;  %1536 = vmatpush.msra.mxu0 %v1513_v29 }
 0x996   : > { %1371 = vrot.lane.b32.xlu0 %v1351_v30, %s2168_s5  ;;  %v2044_v44 = vpop.eup %2043 }
 0x997   : > { %v1057_v47 = vmul.f32 %v2044_v44, %v1041_v48  ;;  %v2046_v54 = vpop.eup %2045  ;;  %v1967_v44 = vld [vmem:[#allocation2 + $0x148] ss:$0 sm:$0xff] }
 0x998   : > { %v1058_v11 = vmul.f32 %v2046_v54, %v2450_v7 }
 0x99b   : > { %v1338_v33 = vpop.f32.mrf.mxu3 }
 0x99c   : > { %v1352_v35 = vmul.f32 %v2042_v24, %v1338_v33  ;;  %v1512_v24 = vld [vmem:[#allocation2 + $0x190] sm:$0xff] }
 0x99d   : > { %1537 = vmatpush.msra.mxu0 %v1512_v24 }
 0x99e   : > { %1373 = vrot.lane.b32.xlu2 %v1352_v35, %s2168_s5  ;;  %1365 = vrot.lane.b32.xlu0 %v1254_v34, %s2169_s7 }
 0x9e3   : > { %v1364_v50 = vpop.permute.xlu2 %1363 }
 0x9f7   : > { %v1356_v46 = vpop.permute.xlu1 %1355 }
 0x9f8   : > { %v1377_v49 = vsel %vm213_vm0, %v1057_v47, %v1356_v46  ;;  %v1374_v58 = vpop.permute.xlu2 %1373 }
 0x9f9   : > { %v1379_v9 = vsel %vm334_vm2, %v1377_v49, %v1364_v50 }
 0xa00   : > { %v1358_v55 = vpop.permute.xlu1 %1357 }
 0xa01   : > { %v1378_v56 = vsel %vm213_vm0, %v1058_v11, %v1358_v55  ;;  %v1511_v55 = vld [vmem:[#allocation2 + $0x188] sm:$0xff]  ;;  %v1510_v11 = vld [vmem:[#allocation2 + $0x180] sm:$0xff] }
 0xa02   : > { %1538 = vmatpush.msra.mxu0 %v1511_v55 }
 0xa04   : > { %1539 = vmatpush.msra.mxu0 %v1510_v11 }
 0xa08   : > { %v1372_v51 = vpop.permute.xlu0 %1371 }
 0xa09   : > { %v1381_v53 = vsel %vm698_vm3, %v1379_v9, %v1372_v51 }
 0xa0a   : > { %1828 = vmatmul.msk.f32.vlgmr.msra.gmra.mxu1 %vm249_vm1, %v1381_v53 }
 0xa10   : > { %v1366_v57 = vpop.permute.xlu0 %1365 }
 0xa11   : > { %v1380_v59 = vsel %vm334_vm2, %v1378_v56, %v1366_v57  ;;  %v1509_v56 = vld [vmem:[#allocation2 + $0x178] sm:$0xff]  ;;  %v1968_v57 = vld [vmem:[#allocation2 + $0x170] ss:$0 sm:$0xff] }
 0xa12   : > { %v1382_v60 = vsel %vm698_vm3, %v1380_v59, %v1374_v58  ;;  %1540 = vmatpush.msra.mxu0 %v1509_v56 }
 0xa13   : > { %1829 = vmatmul.msk.f32.gmra.mxu1 %vm249_vm1, %v1382_v60 }
 0xa87   : > { %v1412_v62 = vpop.f32.mrf.mxu1 }
 0xa88   : > { %v1413_v63 = vadd.f32 %v1965_v61, %v1412_v62 }
 0xa8a   : > { %v1418_v0 = vadd.f32 %v1413_v63, %v2383_v23 }
 0xa8c   : > { %v1422_v2 = vsel %vm249_vm1, %v1418_v0, 0.0 }
 0xa8d   : > { %1423 = vadd.xlane.f32.xlu1 %v1422_v2 }
 0xa90   : > { %v1415_v48 = vpop.f32.mrf.mxu1 }
 0xa91   : > { %v1416_v3 = vadd.f32 %v1965_v61, %v1415_v48 }
 0xa93   : > { %v1419_v4 = vadd.f32 %v1416_v3, %v2388_v37  ;;  %v1475_v37 = vld [vmem:[#allocation2 + $0x168] sm:$0xff] }
 0xa94   : > { %1496 = vmatpush.msra.mxu2 %v1475_v37 }
 0xa95   : > { %v1425_v5 = vsel %vm249_vm1, %v1419_v4, 0.0 }
 0xa96   : > { %1426 = vadd.xlane.f32.xlu0 %v1425_v5  ;;  %1497 = vmatpush.msra.mxu2 %v1474_v16 }
 0xa98   : > { %1498 = vmatpush.msra.mxu2 %v1473_v17 }
 0xa9a   : > { %1499 = vmatpush.msra.mxu2 %v1472_v18  ;;  %v1605_v18 = vld [vmem:[#allocation2 + $0x1e8] sm:$0xff] }
 0xa9b   : > { %1626 = vmatpush.msra.mxu3 %v1605_v18 }
 0xb00   : > { %v1424_v6 = vpop.xlane.xlu1 %1423 }
 0xb01   : > { %v1428_v7 = vmul.f32 %v1424_v6, %v2364_v52 }
 0xb03   : > { %v1430_v8 = vsub.f32 %v1418_v0, %v1428_v7  ;;  %v1969_v0 = vld [vmem:[#allocation2 + $0x1b8] ss:$0 sm:$0xff] }
 0xb05   : > { %v1432_v10 = vmul.f32 %v1430_v8, %v1430_v8 }
 0xb07   : > { %v1434_v12 = vsel %vm249_vm1, %v1432_v10, 0.0 }
 0xb08   : > { %1435 = vadd.xlane.f32.xlu2 %v1434_v12 }
 0xb09   : > { %v1427_v13 = vpop.xlane.xlu0 %1426 }
 0xb0a   : > { %v1429_v23 = vmul.f32 %v1427_v13, %v2364_v52 }
 0xb0c   : > { %v1431_v14 = vsub.f32 %v1419_v4, %v1429_v23 }
 0xb0e   : > { %v1433_v1 = vmul.f32 %v1431_v14, %v1431_v14 }
 0xb10   : > { %v1437_v15 = vsel %vm249_vm1, %v1433_v1, 0.0 }
 0xb11   : > { %1438 = vadd.xlane.f32.xlu1 %v1437_v15 }
 0xb7b   : > { %v1436_v19 = vpop.xlane.xlu2 %1435 }
 0xb7c   : > { %v1440_v20 = vmul.f32 %v1436_v19, %v2364_v52  ;;  %v1604_v19 = vld [vmem:[#allocation2 + $0x1e0] sm:$0xff] }
 0xb7d   : > { %1627 = vmatpush.msra.mxu3 %v1604_v19 }
 0xb7e   : > { %v1442_v21 = vadd.f32 1e-05, %v1440_v20  ;;  %v1603_v20 = vld [vmem:[#allocation2 + $0x1d8] sm:$0xff] }
 0xb7f   : > { %1628 = vmatpush.msra.mxu3 %v1603_v20 }
 0xb80   : > { %2047 = vrsqrt.f32 %v1442_v21  ;;  %vm1450_vm2 = vweird.f32 %v1442_v21 }
 0xb84   : > { %v1439_v27 = vpop.xlane.xlu1 %1438 }
 0xb85   : > { %v1441_v28 = vmul.f32 %v1439_v27, %v2364_v52 }
 0xb86   : > { %v2048_v30 = vpop.eup %2047 }
 0xb87   : > { %v1445_v31 = vmul.f32 %v2048_v30, %v1442_v21  ;;  %v1443_v32 = vadd.f32 1e-05, %v1441_v28  ;;  %vm1451_vm0 = vweird.f32 %v2048_v30  ;;  %v1602_v21 = vld [vmem:[#allocation2 + $0x1d0] sm:$0xff] }
 0xb88   : > { %vm1452_vm3 = vmor %vm1450_vm2, %vm1451_vm0  ;;  %1629 = vmatpush.msra.mxu3 %v1602_v21 }
 0xb89   : > { %v1446_v33 = vmul.f32 %v2048_v30, %v1445_v31  ;;  %2049 = vrsqrt.f32 %v1443_v32  ;;  %vm1460_vm7 = vweird.f32 %v1443_v32 }
 0xb8b   : > { %v1447_v34 = vmul.f32 0.5, %v1446_v33 }
 0xb8d   : > { %v1448_v35 = vsub.f32 1.5, %v1447_v34 }
 0xb8f   : > { %v2050_v38 = vpop.eup %2049  ;;  %v1449_v39 = vmul.f32 %v2048_v30, %v1448_v35 }
 0xb90   : > { %v1455_v41 = vmul.f32 %v2050_v38, %v1443_v32  ;;  %vm1461_vm6 = vweird.f32 %v2050_v38 }
 0xb91   : > { %v1453_v42 = vsel %vm1452_vm3, %v2048_v30, %v1449_v39  ;;  %vm1462_vm8 = vmor %vm1460_vm7, %vm1461_vm6 }
 0xb92   : > { %v1464_v36 = vmul.f32 %v1453_v42, %v1430_v8  ;;  %v1456_v43 = vmul.f32 %v2050_v38, %v1455_v41 }
 0xb94   : > { %v1467_v45 = vmul.f32 %v1966_v40, %v1464_v36  ;;  %v1457_v46 = vmul.f32 0.5, %v1456_v43  ;;  %v1971_v36 = vld [vmem:[#allocation2 + $0x1c8] ss:$0 sm:$0xff] }
 0xb96   : > { %v1458_v47 = vsub.f32 1.5, %v1457_v46  ;;  %v1470_v49 = vadd.f32 %v1967_v44, %v1467_v45 }
 0xb98   : > { %v1459_v50 = vmul.f32 %v2050_v38, %v1458_v47  ;;  %1830 = vmatmul.msk.f32.vlgmr.msra.gmra.mxu2 %vm249_vm1, %v1470_v49 }
 0xb9a   : > { %v1463_v51 = vsel %vm1462_vm8, %v2050_v38, %v1459_v50  ;;  %v1970_v38 = vld [vmem:[#allocation2 + $0x1c0] ss:$0 sm:$0xff] }
 0xb9b   : > { %v1465_v9 = vmul.f32 %v1463_v51, %v1431_v14 }
 0xb9d   : > { %v1468_v53 = vmul.f32 %v1966_v40, %v1465_v9  ;;  %v1972_v9 = vld [vmem:[#allocation2 + $0x1f0] ss:$0 sm:$0xff] }
 0xb9f   : > { %v1471_v54 = vadd.f32 %v1967_v44, %v1468_v53 }
 0xba1   : > { %1831 = vmatmul.msk.f32.gmra.mxu2 %vm249_vm1, %v1471_v54 }
 0xc1b   : > { %v1501_v58 = vpop.f32.mrf.mxu2 }
 0xc1c   : > { %v1502_v59 = vadd.f32 %v1968_v57, %v1501_v58 }
 0xc1e   : > { %v1507_v60 = vmax.f32 %v1502_v59, 0.0 }
 0xc20   : > { %1832 = vmatmul.msk.f32.vlgmr.msra.gmra.mxu0 %vm844_vm11, %v1507_v60 }
 0xc24   : > { %v1504_v61 = vpop.f32.mrf.mxu2 }
 0xc25   : > { %v1505_v62 = vadd.f32 %v1968_v57, %v1504_v61 }
 0xc27   : > { %v1508_v63 = vmax.f32 %v1505_v62, 0.0 }
 0xc29   : > { %1833 = vmatmul.msk.f32.gmra.mxu0 %vm844_vm11, %v1508_v63 }
 0xc9d   : > { %v1542_v2 = vpop.f32.mrf.mxu0 }
 0xc9e   : > { %v1543_v48 = vadd.f32 %v1969_v0, %v1542_v2 }
 0xca0   : > { %v1548_v3 = vadd.f32 %v1543_v48, %v1470_v49 }
 0xca2   : > { %v1552_v4 = vsel %vm249_vm1, %v1548_v3, 0.0 }
 0xca3   : > { %1553 = vadd.xlane.f32.xlu0 %v1552_v4 }
 0xca6   : > { %v1545_v5 = vpop.f32.mrf.mxu0 }
 0xca7   : > { %v1546_v6 = vadd.f32 %v1969_v0, %v1545_v5 }
 0xca9   : > { %v1549_v7 = vadd.f32 %v1546_v6, %v1471_v54 }
 0xcab   : > { %v1555_v8 = vsel %vm249_vm1, %v1549_v7, 0.0 }
 0xcac   : > { %1556 = vadd.xlane.f32.xlu2 %v1555_v8 }
 0xd16   : > { %v1554_v10 = vpop.xlane.xlu0 %1553 }
 0xd17   : > { %v1558_v12 = vmul.f32 %v1554_v10, %v2364_v52 }
 0xd19   : > { %v1560_v13 = vsub.f32 %v1548_v3, %v1558_v12 }
 0xd1b   : > { %v1562_v23 = vmul.f32 %v1560_v13, %v1560_v13 }
 0xd1d   : > { %v1564_v14 = vsel %vm249_vm1, %v1562_v23, 0.0 }
 0xd1e   : > { %1565 = vadd.xlane.f32.xlu1 %v1564_v14 }
 0xd1f   : > { %v1557_v1 = vpop.xlane.xlu2 %1556 }
 0xd20   : > { %v1559_v15 = vmul.f32 %v1557_v1, %v2364_v52 }
 0xd22   : > { %v1561_v37 = vsub.f32 %v1549_v7, %v1559_v15 }
 0xd24   : > { %v1563_v16 = vmul.f32 %v1561_v37, %v1561_v37 }
 0xd26   : > { %v1567_v17 = vsel %vm249_vm1, %v1563_v16, 0.0 }
 0xd27   : > { %1568 = vadd.xlane.f32.xlu0 %v1567_v17 }
 0xd91   : > { %v1566_v22 = vpop.xlane.xlu1 %1565 }
 0xd92   : > { %v1570_v25 = vmul.f32 %v1566_v22, %v2364_v52 }
 0xd94   : > { %v1572_v26 = vadd.f32 1e-05, %v1570_v25 }
 0xd96   : > { %2051 = vrsqrt.f32 %v1572_v26  ;;  %vm1580_vm10 = vweird.f32 %v1572_v26 }
 0xd9a   : > { %v1569_v27 = vpop.xlane.xlu0 %1568 }
 0xd9b   : > { %v1571_v28 = vmul.f32 %v1569_v27, %v2364_v52 }
 0xd9c   : > { %v2052_v29 = vpop.eup %2051 }
 0xd9d   : > { %v1575_v30 = vmul.f32 %v2052_v29, %v1572_v26  ;;  %v1573_v31 = vadd.f32 1e-05, %v1571_v28  ;;  %vm1581_vm9 = vweird.f32 %v2052_v29 }
 0xd9e   : > { %vm1582_vm11 = vmor %vm1580_vm10, %vm1581_vm9 }
 0xd9f   : > { %v1576_v32 = vmul.f32 %v2052_v29, %v1575_v30  ;;  %2053 = vrsqrt.f32 %v1573_v31  ;;  %vm1590_vm13 = vweird.f32 %v1573_v31 }
 0xda1   : > { %v1577_v24 = vmul.f32 0.5, %v1576_v32 }
 0xda3   : > { %v1578_v33 = vsub.f32 1.5, %v1577_v24 }
 0xda5   : > { %v2054_v34 = vpop.eup %2053  ;;  %v1579_v35 = vmul.f32 %v2052_v29, %v1578_v33 }
 0xda6   : > { %v1585_v39 = vmul.f32 %v2054_v34, %v1573_v31  ;;  %vm1591_vm12 = vweird.f32 %v2054_v34 }
 0xda7   : > { %v1583_v40 = vsel %vm1582_vm11, %v2052_v29, %v1579_v35  ;;  %vm1592_vm14 = vmor %vm1590_vm13, %vm1591_vm12 }
 0xda8   : > { %v1594_v41 = vmul.f32 %v1583_v40, %v1560_v13  ;;  %v1586_v42 = vmul.f32 %v2054_v34, %v1585_v39 }
 0xdaa   : > { %v1597_v52 = vmul.f32 %v1970_v38, %v1594_v41  ;;  %v1587_v43 = vmul.f32 0.5, %v1586_v42 }
 0xdac   : > { %v1588_v44 = vsub.f32 1.5, %v1587_v43  ;;  %v1600_v45 = vadd.f32 %v1971_v36, %v1597_v52 }
 0xdae   : > { %v1589_v46 = vmul.f32 %v2054_v34, %v1588_v44  ;;  %1834 = vmatmul.msk.f32.vlgmr.msra.gmra.mxu3 %vm249_vm1, %v1600_v45 }
 0xdb0   : > { %v1593_v47 = vsel %vm1592_vm14, %v2054_v34, %v1589_v46 }
 0xdb1   : > { %v1595_v49 = vmul.f32 %v1593_v47, %v1561_v37 }
 0xdb3   : > { %v1598_v50 = vmul.f32 %v1970_v38, %v1595_v49 }
 0xdb5   : > { %v1601_v51 = vadd.f32 %v1971_v36, %v1598_v50 }
 0xdb7   : > { %1835 = vmatmul.msk.f32.gmra.mxu3 %vm249_vm1, %v1601_v51 }
 0xe31   : > { %v1631_v53 = vpop.f32.mrf.mxu3 }
 0xe32   : > { %v1632_v54 = vadd.f32 %v1972_v9, %v1631_v53 }
 0xe34   : > { %1637 = vst [vmem:[%s195_s11] sm:$0xff] %v1632_v54 }
 0xe3a   : > { %v1634_v55 = vpop.f32.mrf.mxu3 }
 0xe3b   : > { %v1635_v11 = vadd.f32 %v1972_v9, %v1634_v55 }
 0xe3d   : > { %1638 = vst [vmem:[%s195_s11 + $0x8] sm:$0xff] %v1635_v11 }
 0xe3e   : > { %2112 = shalt.err (!%p2109_p8)
}
 0xe3f   : > { %s2171_s7 = smov 128  }
 0xe40   : > { %1851 = dma.vmem_to_hbm [thread:$0]  (%p2230_p5), %s1653_s24, 256, %s1655_s25, %s1640_s26, %s2171_s7, %s2171_s7, %s2167_s4  }
 0xe41 PF: > { %p1863_p9 = scmp.ge.s32.totalorder %s2151_s15, 2  ;;  %s1669_s8 = sand.u32 1, %s2139_s12  }
 0xe42   : > { %s1670_s9 = scalar_lea.sflag [#allocation4], %s1669_s8 }
 0xe43   : > { %p1858_p10 = pnand %p1863_p9, %p2234_p6 }
 0xe45   : > { %p1859_p11 = pneg %p1858_p10 }
 0xe47   : > { %2134 = dma.done.wait (%p1859_p11), %s1670_s9, 256  }
 0xe48   : > { %2136 = vsyncadd (%p1859_p11), %s1670_s9, 4294967040  ;;  %p14_p12 = scmp.ge.s32.totalorder %s2217_s18, 6   ;;  %s2530_s12 = smov %s2143_s13 }
 0xe49   : > { %s2531_s13 = smov %s2147_s14  ;;  %s2532_s14 = smov %s2228_s21 }
 0xe4a   : > { %s2533_s15 = smov %s2217_s18  ;;  %16 = sbr.rel (!%p14_p12) target bundleno = 4 (0x4), region = 75 }
 0xe4f   :  { %1676 = vsyncpa [#allocation3], 1 }
 0xe50   :  { %1678 = vsyncpa [#allocation3 + $0x1], 1 }
 0xe51   :  { %1679 = vsyncpa [#allocation4], 1 }
 0xe52   :  { %1681 = vsyncpa [#allocation4 + $0x1], 1 }

</bundles_post_ra>
